<compile_context>
chip_gen: v5e
topology: v5e:2x2
jax: 0.10.0
libtpu: 0.0.40
codegen_flags: <defaults>
</compile_context>

<pallas_src>
import functools
import math

import jax
import jax.numpy as jnp
import numpy as np
from jax.experimental import pallas as pl
from jax.experimental.pallas import tpu as pltpu

SQRT_HALF = math.sqrt(0.5)
NEG_BIG = -1e30  # finite "masked" value (avoids -inf -> NaN on fully-masked rows)
LANES = 128


# ----------------------------- in-kernel helpers ---------------------------

def _mm(a, b_bf16):
    """MXU matmul: bf16 operands (weights already bf16), f32 accumulation."""
    return jnp.dot(a.astype(jnp.bfloat16), b_bf16,
                   preferred_element_type=jnp.float32)


def _mm_nt(a, b_bf16):
    """a @ b.T with bf16 operands, f32 accumulation (MXU 'NT' matmul)."""
    return jax.lax.dot_general(a.astype(jnp.bfloat16), b_bf16,
                               (((1,), (1,)), ((), ())),
                               preferred_element_type=jnp.float32)


# ------------------------------ fused kernel -------------------------------

def _cnn_fused_kernel(x_enc_ref, x_dec_ref, attn_bias_ref,
                      w_hh_ref, w_conv_ref, w_cls_ref, b_ref, o_ref,
                      *, B, S_in, S_out, H, K,
                      enc_has_proj, dec_has_proj, scale):
    f32 = jnp.float32
    rows_in, rows_out = B * S_in, B * S_out
    offs_enc = tuple(k - (K - 1) // 2 for k in range(K))   # 'same' conv taps
    offs_dec = tuple(k - (K - 1) for k in range(K))        # causal conv taps

    # ---- slab cursors; consumption order MUST match pack_params() order ----
    cur = {"hh": 0, "conv": 0, "b": 0}

    def next_hh():
        w = w_hh_ref[cur["hh"]]; cur["hh"] += 1
        return w                                            # (H, H) bf16

    def next_conv():
        w = w_conv_ref[cur["conv"]]; cur["conv"] += 1
        return w                                            # (H, K*2H) bf16

    def next_b(width):
        b = b_ref[cur["b"]][:, :width]; cur["b"] += 1
        return b                                            # (1, width) f32

    # ---- hoisted inputs (each HBM->VMEM tile read once) ----
    x_enc = x_enc_ref[...]                                  # (B*S_in, H)  f32
    x_dec = x_dec_ref[...]                                  # (B*S_out, H) f32
    attn_bias = attn_bias_ref[...]                          # (B*S_out, B*S_in) f32

    # Zero-masks for conv taps that fall in the zero padding (or would cross a
    # batch boundary after the roll).  Computed once, reused by every layer.
    def make_masks(rows, S, offs):
        r = jax.lax.broadcasted_iota(jnp.int32, (rows, 1), 0)
        s = r % S
        return [None if off == 0 else
                ((s + off >= 0) & (s + off < S)).astype(f32)
                for off in offs]

    masks_enc = make_masks(rows_in, S_in, offs_enc)
    masks_dec = make_masks(rows_out, S_out, offs_dec)

    def conv_glu(h, w_cat, bias, masks, offs, rows):
        # Single MXU matmul; the K sequence shifts are sublane rolls (XLU) +
        # edge masks, so no shift-matrix matmuls are needed.
        y = _mm(h, w_cat)                                   # (rows, K*2H) f32
        acc = jnp.zeros((rows, 2 * H), f32) + bias
        for k, off in enumerate(offs):
            blk = y[:, 2 * H * k:2 * H * (k + 1)]
            if off == 0:
                acc = acc + blk
            else:
                blk = pltpu.roll(blk, (-off) % rows, 0)     # row i <- y[i + off]
                acc = acc + masks[k] * blk
        return acc[:, :H] * jax.nn.sigmoid(acc[:, H:])      # nn.GLU(dim=-1)

    # ------------------------------ Encoder ------------------------------
    proj_emb = _mm(x_enc, next_hh()) + next_b(H)            # in_proj
    hidden, x = proj_emb, x_enc
    for hp in enc_has_proj:
        res = (_mm(x, next_hh()) + next_b(H)) if hp else x
        glu = conv_glu(hidden, next_conv(), next_b(2 * H),
                       masks_enc, offs_enc, rows_in)
        hidden = (glu + res) * SQRT_HALF
        x = hidden
    enc_out = _mm(x, next_hh()) + next_b(H)                 # out_proj (GradMultiply = id)
    in_emb = proj_emb
    enc_out_bf = enc_out.astype(jnp.bfloat16)               # hoisted, reused casts
    in_emb_bf = in_emb.astype(jnp.bfloat16)

    # ------------------------------ Decoder ------------------------------
    hidden = _mm(x_dec, next_hh()) + next_b(H)              # in_proj
    out_emb = x_dec
    for hp in dec_has_proj:
        res = (_mm(hidden, next_hh()) + next_b(H)) if hp else hidden
        glu = conv_glu(hidden, next_conv(), next_b(2 * H),
                       masks_dec, offs_dec, rows_out)
        # Attention (batch folded into M; cross-batch/pad keys killed by attn_bias).
        d = (_mm(glu, next_hh()) + next_b(H) + out_emb) * SQRT_HALF
        scores = _mm_nt(d, enc_out_bf) + attn_bias          # (B*S_out, B*S_in)
        scores = scores - jnp.max(scores, axis=-1, keepdims=True)
        p = jnp.exp(scores)
        p = p * pl.reciprocal(jnp.sum(p, axis=-1, keepdims=True), approx=True)
        att = _mm(p, in_emb_bf) * scale
        att = (att + glu) * SQRT_HALF                       # Attention residual
        hidden = (att + res) * SQRT_HALF                    # DecoderLayer residual
    dec_out = _mm(hidden, next_hh()) + next_b(H)            # out_proj

    # --------- Classifier (lane-dense: vocab padded to 128 lanes) ----------
    o_ref[...] = _mm(dec_out, w_cls_ref[...]) + next_b(LANES)


# ------------------------------- packing ------------------------------------

def pack_params(params, *, K):
    """Pack all parameters into a few slabs (bf16 weights, f32 biases).

    Call once per parameter set and reuse for every forward (removes per-call
    host work).  Packing order below MUST match the consumption order inside
    _cnn_fused_kernel.
    """
    f32, bf16 = jnp.float32, jnp.bfloat16
    H = params["enc_in_proj_w"].shape[0]
    V = params["cls_w"].shape[1]
    assert 2 * H <= LANES and V <= LANES, "kernel assumes 2H and vocab <= 128 lanes"

    enc_has_proj = tuple("proj_w" in lay for lay in params["enc_layers"])
    dec_has_proj = tuple("proj_w" in lay for lay in params["dec_layers"])

    def pad_b(b):
        b = jnp.asarray(b, f32).reshape(1, -1)
        return jnp.zeros((1, LANES), f32).at[:, :b.shape[1]].set(b)

    def cat_conv(w):                        # (K, H, 2H) -> (H, K*2H)
        return jnp.concatenate(list(w), axis=1)

    hh, convs, biases = [], [], []
    hh.append(params["enc_in_proj_w"]); biases.append(pad_b(params["enc_in_proj_b"]))
    for lay in params["enc_layers"]:
        if "proj_w" in lay:
            hh.append(lay["proj_w"]); biases.append(pad_b(lay["proj_b"]))
        convs.append(cat_conv(lay["conv_w"])); biases.append(pad_b(lay["conv_b"]))
    hh.append(params["enc_out_proj_w"]); biases.append(pad_b(params["enc_out_proj_b"]))
    hh.append(params["dec_in_proj_w"]); biases.append(pad_b(params["dec_in_proj_b"]))
    for lay in params["dec_layers"]:
        if "proj_w" in lay:
            hh.append(lay["proj_w"]); biases.append(pad_b(lay["proj_b"]))
        convs.append(cat_conv(lay["conv_w"])); biases.append(pad_b(lay["conv_b"]))
        hh.append(lay["attn_w"]); biases.append(pad_b(lay["attn_b"]))
    hh.append(params["dec_out_proj_w"]); biases.append(pad_b(params["dec_out_proj_b"]))
    biases.append(pad_b(params["cls_b"]))

    w_cls = jnp.zeros((H, LANES), f32).at[:, :V].set(params["cls_w"])

    packed = {
        "w_hh": jnp.stack(hh).astype(bf16),       # (N_hh, H, H)
        "w_conv": jnp.stack(convs).astype(bf16),  # (N_conv, H, K*2H)
        "w_cls": w_cls.astype(bf16),              # (H, 128)
        "biases": jnp.stack(biases),              # (N_b, 1, 128) f32
    }
    cfg = dict(H=H, V=V, K=K,
               enc_has_proj=enc_has_proj, dec_has_proj=dec_has_proj)
    return packed, cfg


# ------------------------------- wrapper ------------------------------------

def _flop_estimate(B, S_in, S_out, H, K, enc_has_proj, dec_has_proj):
    rin, rout = B * S_in, B * S_out
    flops = 2 * rin * H * H                      # enc in_proj
    for hp in enc_has_proj:
        flops += 2 * rin * H * (K * 2 * H) + (2 * rin * H * H if hp else 0)
    flops += 2 * rin * H * H                     # enc out_proj
    flops += 2 * rout * H * H                    # dec in_proj
    for hp in dec_has_proj:
        flops += 2 * rout * H * (K * 2 * H)      # conv
        flops += 2 * rout * H * H                # attention projection
        flops += 2 * rout * H * rin              # scores
        flops += 2 * rout * rin * H              # attention output
        if hp:
            flops += 2 * rout * H * H
    flops += 2 * rout * H * H                    # dec out_proj
    flops += 2 * rout * H * LANES                # classifier (lane-padded)
    return int(flops)


def cnn_forward_pallas(packed, cfg, enc_x, dec_x, mask):
    """Fused encoder+decoder+classifier forward.

    enc_x/dec_x are the (embedded + positional) inputs; mask is (B, 1, S_in)
    with 1.0 marking padded source positions.
    """
    H, V, K = cfg["H"], cfg["V"], cfg["K"]
    enc_has_proj, dec_has_proj = cfg["enc_has_proj"], cfg["dec_has_proj"]
    B, S_in, _ = enc_x.shape
    S_out = dec_x.shape[1]
    rows_in, rows_out = B * S_in, B * S_out

    # Batch folded into the M dimension (stacked activations).
    x_enc = enc_x.reshape(rows_in, H).astype(jnp.float32)
    x_dec = dec_x.reshape(rows_out, H).astype(jnp.float32)

    # Additive attention bias: NEG_BIG on padded keys and on cross-batch blocks.
    qb = jnp.repeat(jnp.arange(B, dtype=jnp.int32), S_out)
    kb = jnp.repeat(jnp.arange(B, dtype=jnp.int32), S_in)
    key_pad = mask.reshape(rows_in) > 0.0
    masked = (qb[:, None] != kb[None, :]) | key_pad[None, :]
    attn_bias = jnp.where(masked, NEG_BIG, 0.0).astype(jnp.float32)

    scale = float(S_in) * math.sqrt(1.0 / S_in)
    kernel = functools.partial(
        _cnn_fused_kernel, B=B, S_in=S_in, S_out=S_out, H=H, K=K,
        enc_has_proj=enc_has_proj, dec_has_proj=dec_has_proj, scale=scale)

    args = (x_enc, x_dec, attn_bias, packed["w_hh"], packed["w_conv"],
            packed["w_cls"], packed["biases"])
    bytes_accessed = sum(int(a.size) * a.dtype.itemsize for a in args) \
        + rows_out * LANES * 4
    cost = pl.CostEstimate(
        flops=_flop_estimate(B, S_in, S_out, H, K, enc_has_proj, dec_has_proj),
        transcendentals=int(len(enc_has_proj) * rows_in * H
                            + len(dec_has_proj) * (rows_out * H
                                                   + 2 * rows_out * rows_in)),
        bytes_accessed=int(bytes_accessed))

    out = pl.pallas_call(
        kernel,
        out_shape=jax.ShapeDtypeStruct((rows_out, LANES), jnp.float32),
        compiler_params=pltpu.CompilerParams(vmem_limit_bytes=4 * 1024 * 1024),
        cost_estimate=cost,
    )(*args)
    # TODO(synk): on v7x (2 TensorCores) split the batch across the cores with
    # a grid=(2,)+dimension_semantics=("parallel",) variant; keep this fully
    # fused single-program form on v5e/v6e (single TC).
    return out[:, :V].reshape(B, S_out, V)


# ------------------------ pure-JAX reference (same numerics spec) -----------

def cnn_forward_ref(params, enc_x, dec_x, mask, *, K):
    bf16, f32 = jnp.bfloat16, jnp.float32

    def lin(x, w, b):
        return jnp.einsum("...h,ho->...o", x.astype(bf16), w.astype(bf16),
                          preferred_element_type=f32) + b

    def conv_glu(h, w, bias, pad_left, pad_right):
        Bb, S, H = h.shape
        hp = jnp.pad(h, ((0, 0), (pad_left, pad_right), (0, 0)))
        acc = jnp.zeros((Bb, S, 2 * H), f32) + bias
        for k in range(K):
            acc = acc + jnp.einsum("bsh,ho->bso", hp[:, k:k + S].astype(bf16),
                                   w[k].astype(bf16), preferred_element_type=f32)
        return acc[..., :H] * jax.nn.sigmoid(acc[..., H:])

    # Encoder
    proj_emb = lin(enc_x, params["enc_in_proj_w"], params["enc_in_proj_b"])
    hidden, x = proj_emb, enc_x
    pad_l = (K - 1) // 2
    pad_r = (K - 1) - pad_l
    for lay in params["enc_layers"]:
        res = x
        if "proj_w" in lay:
            res = lin(res, lay["proj_w"], lay["proj_b"])
        glu = conv_glu(hidden, lay["conv_w"], lay["conv_b"], pad_l, pad_r)
        hidden = (glu + res) * SQRT_HALF
        x = hidden
    enc_out = lin(x, params["enc_out_proj_w"], params["enc_out_proj_b"])
    in_emb = proj_emb

    # Decoder
    hidden = lin(dec_x, params["dec_in_proj_w"], params["dec_in_proj_b"])
    S_in = enc_x.shape[1]
    scale = float(S_in) * math.sqrt(1.0 / S_in)
    for lay in params["dec_layers"]:
        res = hidden
        if "proj_w" in lay:
            res = lin(res, lay["proj_w"], lay["proj_b"])
        glu = conv_glu(hidden, lay["conv_w"], lay["conv_b"], K - 1, 0)
        d = (lin(glu, lay["attn_w"], lay["attn_b"]) + dec_x) * SQRT_HALF
        w = jnp.einsum("bqh,bkh->bqk", d.astype(bf16), enc_out.astype(bf16),
                       preferred_element_type=f32)
        w = jnp.where(mask > 0.0, NEG_BIG, w)
        w = w - jnp.max(w, axis=-1, keepdims=True)
        p = jnp.exp(w)
        p = p / jnp.sum(p, axis=-1, keepdims=True)
        att = jnp.einsum("bqk,bkh->bqh", p.astype(bf16), in_emb.astype(bf16),
                         preferred_element_type=f32) * scale
        att = (att + glu) * SQRT_HALF
        hidden = (att + res) * SQRT_HALF
    dec_out = lin(hidden, params["dec_out_proj_w"], params["dec_out_proj_b"])
    return lin(dec_out, params["cls_w"], params["cls_b"])


# ---------------------------- model parameters -----------------------------

def positional_encoding(max_len, hidden):
    pos = jnp.arange(max_len, dtype=jnp.float32)[:, None]
    div = jnp.exp(jnp.arange(0, hidden, 2, dtype=jnp.float32)
                  * (-math.log(10000.0) / hidden))
    pe = jnp.zeros((max_len, hidden), jnp.float32)
    pe = pe.at[:, 0::2].set(jnp.sin(pos * div))
    pe = pe.at[:, 1::2].set(jnp.cos(pos * div))
    return pe


def init_params(key, H, K, p, in_vocab, out_vocab, n_enc, n_dec):
    keys = iter(jax.random.split(key, 128))

    def nrm(shape, std):
        return jax.random.normal(next(keys), shape, jnp.float32) * std

    params = {
        "enc_emb": nrm((in_vocab, H), 0.1),
        "enc_in_proj_w": nrm((H, H), math.sqrt((1.0 - p) / H)),
        "enc_in_proj_b": jnp.zeros((H,), jnp.float32),
        "enc_out_proj_w": nrm((H, H), math.sqrt(1.0 / H)),
        "enc_out_proj_b": jnp.zeros((H,), jnp.float32),
        "dec_emb": nrm((out_vocab, H), 0.1),
        "dec_in_proj_w": nrm((H, H), math.sqrt((1.0 - p) / H)),
        "dec_in_proj_b": jnp.zeros((H,), jnp.float32),
        "dec_out_proj_w": nrm((H, H), math.sqrt((1.0 - p) / H)),
        "dec_out_proj_b": jnp.zeros((H,), jnp.float32),
        "cls_w": nrm((H, out_vocab), math.sqrt((1.0 - p) / H)),
        "cls_b": jnp.zeros((out_vocab,), jnp.float32),
    }
    conv_std = math.sqrt(4.0 * (1.0 - p) / (K * H))
    enc_layers = []
    for i in range(n_enc):
        lay = {"conv_w": nrm((K, H, 2 * H), conv_std),
               "conv_b": jnp.zeros((2 * H,), jnp.float32)}
        if i != 0:
            lay["proj_w"] = nrm((H, H), math.sqrt(1.0 / H))
            lay["proj_b"] = jnp.zeros((H,), jnp.float32)
        enc_layers.append(lay)
    params["enc_layers"] = enc_layers
    dec_layers = []
    for i in range(n_dec):
        lay = {"conv_w": nrm((K, H, 2 * H), conv_std),
               "conv_b": jnp.zeros((2 * H,), jnp.float32),
               "attn_w": nrm((H, H), math.sqrt(1.0 / H)),
               "attn_b": jnp.zeros((H,), jnp.float32)}
        if i != 0:
            lay["proj_w"] = nrm((H, H), math.sqrt(1.0 / H))
            lay["proj_b"] = jnp.zeros((H,), jnp.float32)
        dec_layers.append(lay)
    params["dec_layers"] = dec_layers
    return params


# --------------------------------- main ------------------------------------

if __name__ == "__main__":
    H, K, P = 32, 3, 0.1
    IN_VOCAB, OUT_VOCAB = 16, 12
    N_ENC, N_DEC = 2, 2
    PAD = 0
    B, S_IN, S_OUT = 2, 16, 8

    key = jax.random.PRNGKey(0)
    kp, ki, ko = jax.random.split(key, 3)
    params = init_params(kp, H, K, P, IN_VOCAB, OUT_VOCAB, N_ENC, N_DEC)
    pe = positional_encoding(1024, H)

    input_ids = jax.random.randint(ki, (B, S_IN), 1, IN_VOCAB)
    input_ids = input_ids.at[0, -3:].set(PAD)                    # some padding
    output_ids = jax.random.randint(ko, (B, S_OUT), 1, OUT_VOCAB)
    padding_mask = (input_ids == PAD).astype(jnp.float32)[:, None, :]   # (B,1,S_in)

    # TODO(synk): embedding lookup is a scalar gather + positional add, kept in
    # plain JAX outside the kernel; dropout = identity (eval mode).
    enc_x = jnp.take(params["enc_emb"], input_ids, axis=0) + pe[None, :S_IN, :]
    dec_x = jnp.take(params["dec_emb"], output_ids, axis=0) + pe[None, :S_OUT, :]

    packed, cfg = pack_params(params, K=K)       # one-time packing (cacheable)
    out = cnn_forward_pallas(packed, cfg, enc_x, dec_x, padding_mask)
    out = jax.block_until_ready(out)

    ref = cnn_forward_ref(params, enc_x, dec_x, padding_mask, K=K)
    ref = jax.block_until_ready(ref)

    assert out.shape == (B, S_OUT, OUT_VOCAB)
    np.testing.assert_allclose(np.asarray(out), np.asarray(ref),
                               rtol=2e-2, atol=2e-2)
    print("KERNEL_OK")
</pallas_src>

<mosaic_0001>
module attributes {stable_mosaic.version = 11 : i64} {
  func.func @_cnn_fused_kernel(%arg0: memref<32x32xf32, #tpu.memory_space<vmem>>, %arg1: memref<16x32xf32, #tpu.memory_space<vmem>>, %arg2: memref<16x32xf32, #tpu.memory_space<vmem>>, %arg3: memref<8x32x32xbf16, #tpu.memory_space<vmem>>, %arg4: memref<4x32x192xbf16, #tpu.memory_space<vmem>>, %arg5: memref<32x128xbf16, #tpu.memory_space<vmem>>, %arg6: memref<13x1x128xf32, #tpu.memory_space<vmem>>, %arg7: memref<16x128xf32, #tpu.memory_space<vmem>>) attributes {dimension_semantics = [], scalar_prefetch = 0 : i64, scratch_operands = 0 : i64, tpu.core_type = #tpu.core_type<tc>} {
    %c0 = arith.constant 0 : index
    %c0_0 = arith.constant 0 : index
    %0 = vector.load %arg0[%c0, %c0_0] : memref<32x32xf32, #tpu.memory_space<vmem>>, vector<32x32xf32>
    %c0_1 = arith.constant 0 : index
    %c0_2 = arith.constant 0 : index
    %1 = vector.load %arg1[%c0_1, %c0_2] : memref<16x32xf32, #tpu.memory_space<vmem>>, vector<16x32xf32>
    %c0_3 = arith.constant 0 : index
    %c0_4 = arith.constant 0 : index
    %2 = vector.load %arg2[%c0_3, %c0_4] : memref<16x32xf32, #tpu.memory_space<vmem>>, vector<16x32xf32>
    %3 = tpu.iota {dimensions = array<i32: 0>} : vector<32x1xi32>
    %c16_i32 = arith.constant 16 : i32
    %c0_i32 = arith.constant 0 : i32
    %4 = arith.cmpi eq, %c16_i32, %c0_i32 : i32
    %c1_i32 = arith.constant 1 : i32
    %5 = arith.select %4, %c1_i32, %c16_i32 : i32
    %6 = vector.broadcast %5 : i32 to vector<32x1xi32>
    %7 = arith.remsi %3, %6 : vector<32x1xi32>
    %c0_i32_5 = arith.constant 0 : i32
    %8 = vector.broadcast %c0_i32_5 : i32 to vector<32x1xi32>
    %9 = arith.cmpi ne, %7, %8 : vector<32x1xi32>
    %c0_i32_6 = arith.constant 0 : i32
    %10 = vector.broadcast %c0_i32_6 : i32 to vector<32x1xi32>
    %11 = arith.cmpi slt, %7, %10 : vector<32x1xi32>
    %c0_i32_7 = arith.constant 0 : i32
    %12 = arith.cmpi slt, %5, %c0_i32_7 : i32
    %13 = vector.broadcast %12 : i1 to vector<32x1xi1>
    %14 = vector.broadcast %13 : vector<32x1xi1> to vector<32x1xi1>
    %15 = arith.xori %11, %14 : vector<32x1xi1>
    %16 = arith.andi %15, %9 : vector<32x1xi1>
    %17 = vector.broadcast %5 : i32 to vector<32x1xi32>
    %18 = arith.addi %7, %17 : vector<32x1xi32>
    %19 = arith.select %16, %18, %7 : vector<32x1xi1>, vector<32x1xi32>
    %c-1_i32 = arith.constant -1 : i32
    %20 = vector.broadcast %c-1_i32 : i32 to vector<32x1xi32>
    %21 = arith.addi %19, %20 : vector<32x1xi32>
    %c0_i32_8 = arith.constant 0 : i32
    %22 = vector.broadcast %c0_i32_8 : i32 to vector<32x1xi32>
    %23 = arith.cmpi sge, %21, %22 : vector<32x1xi32>
    %c-1_i32_9 = arith.constant -1 : i32
    %24 = vector.broadcast %c-1_i32_9 : i32 to vector<32x1xi32>
    %25 = arith.addi %19, %24 : vector<32x1xi32>
    %c16_i32_10 = arith.constant 16 : i32
    %26 = vector.broadcast %c16_i32_10 : i32 to vector<32x1xi32>
    %27 = arith.cmpi slt, %25, %26 : vector<32x1xi32>
    %28 = arith.andi %23, %27 : vector<32x1xi1>
    %29 = arith.extui %28 : vector<32x1xi1> to vector<32x1xi32>
    %30 = arith.sitofp %29 : vector<32x1xi32> to vector<32x1xf32>
    %c1_i32_11 = arith.constant 1 : i32
    %31 = vector.broadcast %c1_i32_11 : i32 to vector<32x1xi32>
    %32 = arith.addi %19, %31 : vector<32x1xi32>
    %c0_i32_12 = arith.constant 0 : i32
    %33 = vector.broadcast %c0_i32_12 : i32 to vector<32x1xi32>
    %34 = arith.cmpi sge, %32, %33 : vector<32x1xi32>
    %c1_i32_13 = arith.constant 1 : i32
    %35 = vector.broadcast %c1_i32_13 : i32 to vector<32x1xi32>
    %36 = arith.addi %19, %35 : vector<32x1xi32>
    %c16_i32_14 = arith.constant 16 : i32
    %37 = vector.broadcast %c16_i32_14 : i32 to vector<32x1xi32>
    %38 = arith.cmpi slt, %36, %37 : vector<32x1xi32>
    %39 = arith.andi %34, %38 : vector<32x1xi1>
    %40 = arith.extui %39 : vector<32x1xi1> to vector<32x1xi32>
    %41 = arith.sitofp %40 : vector<32x1xi32> to vector<32x1xf32>
    %42 = tpu.iota {dimensions = array<i32: 0>} : vector<16x1xi32>
    %c8_i32 = arith.constant 8 : i32
    %c0_i32_15 = arith.constant 0 : i32
    %43 = arith.cmpi eq, %c8_i32, %c0_i32_15 : i32
    %c1_i32_16 = arith.constant 1 : i32
    %44 = arith.select %43, %c1_i32_16, %c8_i32 : i32
    %45 = vector.broadcast %44 : i32 to vector<16x1xi32>
    %46 = arith.remsi %42, %45 : vector<16x1xi32>
    %c0_i32_17 = arith.constant 0 : i32
    %47 = vector.broadcast %c0_i32_17 : i32 to vector<16x1xi32>
    %48 = arith.cmpi ne, %46, %47 : vector<16x1xi32>
    %c0_i32_18 = arith.constant 0 : i32
    %49 = vector.broadcast %c0_i32_18 : i32 to vector<16x1xi32>
    %50 = arith.cmpi slt, %46, %49 : vector<16x1xi32>
    %c0_i32_19 = arith.constant 0 : i32
    %51 = arith.cmpi slt, %44, %c0_i32_19 : i32
    %52 = vector.broadcast %51 : i1 to vector<16x1xi1>
    %53 = vector.broadcast %52 : vector<16x1xi1> to vector<16x1xi1>
    %54 = arith.xori %50, %53 : vector<16x1xi1>
    %55 = arith.andi %54, %48 : vector<16x1xi1>
    %56 = vector.broadcast %44 : i32 to vector<16x1xi32>
    %57 = arith.addi %46, %56 : vector<16x1xi32>
    %58 = arith.select %55, %57, %46 : vector<16x1xi1>, vector<16x1xi32>
    %c-2_i32 = arith.constant -2 : i32
    %59 = vector.broadcast %c-2_i32 : i32 to vector<16x1xi32>
    %60 = arith.addi %58, %59 : vector<16x1xi32>
    %c0_i32_20 = arith.constant 0 : i32
    %61 = vector.broadcast %c0_i32_20 : i32 to vector<16x1xi32>
    %62 = arith.cmpi sge, %60, %61 : vector<16x1xi32>
    %c-2_i32_21 = arith.constant -2 : i32
    %63 = vector.broadcast %c-2_i32_21 : i32 to vector<16x1xi32>
    %64 = arith.addi %58, %63 : vector<16x1xi32>
    %c8_i32_22 = arith.constant 8 : i32
    %65 = vector.broadcast %c8_i32_22 : i32 to vector<16x1xi32>
    %66 = arith.cmpi slt, %64, %65 : vector<16x1xi32>
    %67 = arith.andi %62, %66 : vector<16x1xi1>
    %68 = arith.extui %67 : vector<16x1xi1> to vector<16x1xi32>
    %69 = arith.sitofp %68 : vector<16x1xi32> to vector<16x1xf32>
    %c-1_i32_23 = arith.constant -1 : i32
    %70 = vector.broadcast %c-1_i32_23 : i32 to vector<16x1xi32>
    %71 = arith.addi %58, %70 : vector<16x1xi32>
    %c0_i32_24 = arith.constant 0 : i32
    %72 = vector.broadcast %c0_i32_24 : i32 to vector<16x1xi32>
    %73 = arith.cmpi sge, %71, %72 : vector<16x1xi32>
    %c-1_i32_25 = arith.constant -1 : i32
    %74 = vector.broadcast %c-1_i32_25 : i32 to vector<16x1xi32>
    %75 = arith.addi %58, %74 : vector<16x1xi32>
    %c8_i32_26 = arith.constant 8 : i32
    %76 = vector.broadcast %c8_i32_26 : i32 to vector<16x1xi32>
    %77 = arith.cmpi slt, %75, %76 : vector<16x1xi32>
    %78 = arith.andi %73, %77 : vector<16x1xi1>
    %79 = arith.extui %78 : vector<16x1xi1> to vector<16x1xi32>
    %80 = arith.sitofp %79 : vector<16x1xi32> to vector<16x1xf32>
    %c0_27 = arith.constant 0 : index
    %c0_28 = arith.constant 0 : index
    %c0_29 = arith.constant 0 : index
    %81 = vector.load %arg3[%c0_27, %c0_28, %c0_29] : memref<8x32x32xbf16, #tpu.memory_space<vmem>>, vector<1x32x32xbf16>
    %82 = vector.shape_cast %81 : vector<1x32x32xbf16> to vector<32x32xbf16>
    %83 = arith.truncf %0 : vector<32x32xf32> to vector<32x32xbf16>
    %cst = arith.constant dense<0.000000e+00> : vector<32x32xf32>
    %84 = tpu.matmul %83, %82, %cst {dimension_numbers = #tpu.dot_dimension_numbers<[1], [0], [0], [1], [0, 0, 1, 1], [], []>} : vector<32x32xbf16>, vector<32x32xbf16>, vector<32x32xf32> -> vector<32x32xf32>
    %c0_30 = arith.constant 0 : index
    %c0_31 = arith.constant 0 : index
    %c0_32 = arith.constant 0 : index
    %85 = vector.load %arg6[%c0_30, %c0_31, %c0_32] : memref<13x1x128xf32, #tpu.memory_space<vmem>>, vector<1x1x128xf32>
    %86 = vector.shape_cast %85 : vector<1x1x128xf32> to vector<1x128xf32>
    %87 = vector.extract_strided_slice %86 {offsets = [0, 0], sizes = [1, 32], strides = [1, 1]} : vector<1x128xf32> to vector<1x32xf32>
    %88 = vector.broadcast %87 : vector<1x32xf32> to vector<32x32xf32>
    %89 = arith.addf %84, %88 : vector<32x32xf32>
    %c0_33 = arith.constant 0 : index
    %c0_34 = arith.constant 0 : index
    %c0_35 = arith.constant 0 : index
    %90 = vector.load %arg4[%c0_33, %c0_34, %c0_35] : memref<4x32x192xbf16, #tpu.memory_space<vmem>>, vector<1x32x192xbf16>
    %91 = vector.shape_cast %90 : vector<1x32x192xbf16> to vector<32x192xbf16>
    %c1 = arith.constant 1 : index
    %c0_36 = arith.constant 0 : index
    %c0_37 = arith.constant 0 : index
    %92 = vector.load %arg6[%c1, %c0_36, %c0_37] : memref<13x1x128xf32, #tpu.memory_space<vmem>>, vector<1x1x128xf32>
    %93 = vector.shape_cast %92 : vector<1x1x128xf32> to vector<1x128xf32>
    %94 = vector.extract_strided_slice %93 {offsets = [0, 0], sizes = [1, 64], strides = [1, 1]} : vector<1x128xf32> to vector<1x64xf32>
    %95 = arith.truncf %89 : vector<32x32xf32> to vector<32x32xbf16>
    %cst_38 = arith.constant dense<0.000000e+00> : vector<32x192xf32>
    %96 = tpu.matmul %95, %91, %cst_38 {dimension_numbers = #tpu.dot_dimension_numbers<[1], [0], [0], [1], [0, 0, 1, 1], [], []>} : vector<32x32xbf16>, vector<32x192xbf16>, vector<32x192xf32> -> vector<32x192xf32>
    %cst_39 = arith.constant 0.000000e+00 : f32
    %97 = vector.broadcast %cst_39 : f32 to vector<32x64xf32>
    %98 = vector.broadcast %94 : vector<1x64xf32> to vector<32x64xf32>
    %99 = arith.addf %97, %98 : vector<32x64xf32>
    %100 = vector.extract_strided_slice %96 {offsets = [0, 0], sizes = [32, 64], strides = [1, 1]} : vector<32x192xf32> to vector<32x64xf32>
    %c1_i32_40 = arith.constant 1 : i32
    %101 = tpu.dynamic_rotate %100 by %c1_i32_40 dim 0 : vector<32x64xf32>, i32 -> vector<32x64xf32>
    %102 = vector.broadcast %30 : vector<32x1xf32> to vector<32x64xf32>
    %103 = arith.mulf %102, %101 : vector<32x64xf32>
    %104 = arith.addf %99, %103 : vector<32x64xf32>
    %105 = vector.extract_strided_slice %96 {offsets = [0, 64], sizes = [32, 64], strides = [1, 1]} : vector<32x192xf32> to vector<32x64xf32>
    %106 = arith.addf %104, %105 : vector<32x64xf32>
    %107 = vector.extract_strided_slice %96 {offsets = [0, 128], sizes = [32, 64], strides = [1, 1]} : vector<32x192xf32> to vector<32x64xf32>
    %c31_i32 = arith.constant 31 : i32
    %108 = tpu.dynamic_rotate %107 by %c31_i32 dim 0 : vector<32x64xf32>, i32 -> vector<32x64xf32>
    %109 = vector.broadcast %41 : vector<32x1xf32> to vector<32x64xf32>
    %110 = arith.mulf %109, %108 : vector<32x64xf32>
    %111 = arith.addf %106, %110 : vector<32x64xf32>
    %112 = vector.extract_strided_slice %111 {offsets = [0, 0], sizes = [32, 32], strides = [1, 1]} : vector<32x64xf32> to vector<32x32xf32>
    %113 = vector.extract_strided_slice %111 {offsets = [0, 32], sizes = [32, 32], strides = [1, 1]} : vector<32x64xf32> to vector<32x32xf32>
    %114 = arith.negf %113 : vector<32x32xf32>
    %115 = math.exp %114 : vector<32x32xf32>
    %cst_41 = arith.constant 1.000000e+00 : f32
    %116 = vector.broadcast %cst_41 : f32 to vector<32x32xf32>
    %117 = arith.addf %116, %115 : vector<32x32xf32>
    %118 = arith.divf %116, %117 : vector<32x32xf32>
    %119 = arith.mulf %112, %118 : vector<32x32xf32>
    %120 = arith.addf %119, %0 : vector<32x32xf32>
    %cst_42 = arith.constant 0.707106769 : f32
    %121 = vector.broadcast %cst_42 : f32 to vector<32x32xf32>
    %122 = arith.mulf %120, %121 : vector<32x32xf32>
    %c1_43 = arith.constant 1 : index
    %c0_44 = arith.constant 0 : index
    %c0_45 = arith.constant 0 : index
    %123 = vector.load %arg3[%c1_43, %c0_44, %c0_45] : memref<8x32x32xbf16, #tpu.memory_space<vmem>>, vector<1x32x32xbf16>
    %124 = vector.shape_cast %123 : vector<1x32x32xbf16> to vector<32x32xbf16>
    %125 = arith.truncf %122 : vector<32x32xf32> to vector<32x32xbf16>
    %cst_46 = arith.constant dense<0.000000e+00> : vector<32x32xf32>
    %126 = tpu.matmul %125, %124, %cst_46 {dimension_numbers = #tpu.dot_dimension_numbers<[1], [0], [0], [1], [0, 0, 1, 1], [], []>} : vector<32x32xbf16>, vector<32x32xbf16>, vector<32x32xf32> -> vector<32x32xf32>
    %c2 = arith.constant 2 : index
    %c0_47 = arith.constant 0 : index
    %c0_48 = arith.constant 0 : index
    %127 = vector.load %arg6[%c2, %c0_47, %c0_48] : memref<13x1x128xf32, #tpu.memory_space<vmem>>, vector<1x1x128xf32>
    %128 = vector.shape_cast %127 : vector<1x1x128xf32> to vector<1x128xf32>
    %129 = vector.extract_strided_slice %128 {offsets = [0, 0], sizes = [1, 32], strides = [1, 1]} : vector<1x128xf32> to vector<1x32xf32>
    %130 = vector.broadcast %129 : vector<1x32xf32> to vector<32x32xf32>
    %131 = arith.addf %126, %130 : vector<32x32xf32>
    %c1_49 = arith.constant 1 : index
    %c0_50 = arith.constant 0 : index
    %c0_51 = arith.constant 0 : index
    %132 = vector.load %arg4[%c1_49, %c0_50, %c0_51] : memref<4x32x192xbf16, #tpu.memory_space<vmem>>, vector<1x32x192xbf16>
    %133 = vector.shape_cast %132 : vector<1x32x192xbf16> to vector<32x192xbf16>
    %c3 = arith.constant 3 : index
    %c0_52 = arith.constant 0 : index
    %c0_53 = arith.constant 0 : index
    %134 = vector.load %arg6[%c3, %c0_52, %c0_53] : memref<13x1x128xf32, #tpu.memory_space<vmem>>, vector<1x1x128xf32>
    %135 = vector.shape_cast %134 : vector<1x1x128xf32> to vector<1x128xf32>
    %136 = vector.extract_strided_slice %135 {offsets = [0, 0], sizes = [1, 64], strides = [1, 1]} : vector<1x128xf32> to vector<1x64xf32>
    %137 = arith.truncf %122 : vector<32x32xf32> to vector<32x32xbf16>
    %cst_54 = arith.constant dense<0.000000e+00> : vector<32x192xf32>
    %138 = tpu.matmul %137, %133, %cst_54 {dimension_numbers = #tpu.dot_dimension_numbers<[1], [0], [0], [1], [0, 0, 1, 1], [], []>} : vector<32x32xbf16>, vector<32x192xbf16>, vector<32x192xf32> -> vector<32x192xf32>
    %cst_55 = arith.constant 0.000000e+00 : f32
    %139 = vector.broadcast %cst_55 : f32 to vector<32x64xf32>
    %140 = vector.broadcast %136 : vector<1x64xf32> to vector<32x64xf32>
    %141 = arith.addf %139, %140 : vector<32x64xf32>
    %142 = vector.extract_strided_slice %138 {offsets = [0, 0], sizes = [32, 64], strides = [1, 1]} : vector<32x192xf32> to vector<32x64xf32>
    %c1_i32_56 = arith.constant 1 : i32
    %143 = tpu.dynamic_rotate %142 by %c1_i32_56 dim 0 : vector<32x64xf32>, i32 -> vector<32x64xf32>
    %144 = vector.broadcast %30 : vector<32x1xf32> to vector<32x64xf32>
    %145 = arith.mulf %144, %143 : vector<32x64xf32>
    %146 = arith.addf %141, %145 : vector<32x64xf32>
    %147 = vector.extract_strided_slice %138 {offsets = [0, 64], sizes = [32, 64], strides = [1, 1]} : vector<32x192xf32> to vector<32x64xf32>
    %148 = arith.addf %146, %147 : vector<32x64xf32>
    %149 = vector.extract_strided_slice %138 {offsets = [0, 128], sizes = [32, 64], strides = [1, 1]} : vector<32x192xf32> to vector<32x64xf32>
    %c31_i32_57 = arith.constant 31 : i32
    %150 = tpu.dynamic_rotate %149 by %c31_i32_57 dim 0 : vector<32x64xf32>, i32 -> vector<32x64xf32>
    %151 = vector.broadcast %41 : vector<32x1xf32> to vector<32x64xf32>
    %152 = arith.mulf %151, %150 : vector<32x64xf32>
    %153 = arith.addf %148, %152 : vector<32x64xf32>
    %154 = vector.extract_strided_slice %153 {offsets = [0, 0], sizes = [32, 32], strides = [1, 1]} : vector<32x64xf32> to vector<32x32xf32>
    %155 = vector.extract_strided_slice %153 {offsets = [0, 32], sizes = [32, 32], strides = [1, 1]} : vector<32x64xf32> to vector<32x32xf32>
    %156 = arith.negf %155 : vector<32x32xf32>
    %157 = math.exp %156 : vector<32x32xf32>
    %cst_58 = arith.constant 1.000000e+00 : f32
    %158 = vector.broadcast %cst_58 : f32 to vector<32x32xf32>
    %159 = arith.addf %158, %157 : vector<32x32xf32>
    %160 = arith.divf %158, %159 : vector<32x32xf32>
    %161 = arith.mulf %154, %160 : vector<32x32xf32>
    %162 = arith.addf %161, %131 : vector<32x32xf32>
    %cst_59 = arith.constant 0.707106769 : f32
    %163 = vector.broadcast %cst_59 : f32 to vector<32x32xf32>
    %164 = arith.mulf %162, %163 : vector<32x32xf32>
    %c2_60 = arith.constant 2 : index
    %c0_61 = arith.constant 0 : index
    %c0_62 = arith.constant 0 : index
    %165 = vector.load %arg3[%c2_60, %c0_61, %c0_62] : memref<8x32x32xbf16, #tpu.memory_space<vmem>>, vector<1x32x32xbf16>
    %166 = vector.shape_cast %165 : vector<1x32x32xbf16> to vector<32x32xbf16>
    %167 = arith.truncf %164 : vector<32x32xf32> to vector<32x32xbf16>
    %cst_63 = arith.constant dense<0.000000e+00> : vector<32x32xf32>
    %168 = tpu.matmul %167, %166, %cst_63 {dimension_numbers = #tpu.dot_dimension_numbers<[1], [0], [0], [1], [0, 0, 1, 1], [], []>} : vector<32x32xbf16>, vector<32x32xbf16>, vector<32x32xf32> -> vector<32x32xf32>
    %c4 = arith.constant 4 : index
    %c0_64 = arith.constant 0 : index
    %c0_65 = arith.constant 0 : index
    %169 = vector.load %arg6[%c4, %c0_64, %c0_65] : memref<13x1x128xf32, #tpu.memory_space<vmem>>, vector<1x1x128xf32>
    %170 = vector.shape_cast %169 : vector<1x1x128xf32> to vector<1x128xf32>
    %171 = vector.extract_strided_slice %170 {offsets = [0, 0], sizes = [1, 32], strides = [1, 1]} : vector<1x128xf32> to vector<1x32xf32>
    %172 = vector.broadcast %171 : vector<1x32xf32> to vector<32x32xf32>
    %173 = arith.addf %168, %172 : vector<32x32xf32>
    %174 = arith.truncf %173 : vector<32x32xf32> to vector<32x32xbf16>
    %175 = arith.truncf %89 : vector<32x32xf32> to vector<32x32xbf16>
    %c3_66 = arith.constant 3 : index
    %c0_67 = arith.constant 0 : index
    %c0_68 = arith.constant 0 : index
    %176 = vector.load %arg3[%c3_66, %c0_67, %c0_68] : memref<8x32x32xbf16, #tpu.memory_space<vmem>>, vector<1x32x32xbf16>
    %177 = vector.shape_cast %176 : vector<1x32x32xbf16> to vector<32x32xbf16>
    %178 = arith.truncf %1 : vector<16x32xf32> to vector<16x32xbf16>
    %cst_69 = arith.constant dense<0.000000e+00> : vector<16x32xf32>
    %179 = tpu.matmul %178, %177, %cst_69 {dimension_numbers = #tpu.dot_dimension_numbers<[1], [0], [0], [1], [0, 0, 1, 1], [], []>} : vector<16x32xbf16>, vector<32x32xbf16>, vector<16x32xf32> -> vector<16x32xf32>
    %c5 = arith.constant 5 : index
    %c0_70 = arith.constant 0 : index
    %c0_71 = arith.constant 0 : index
    %180 = vector.load %arg6[%c5, %c0_70, %c0_71] : memref<13x1x128xf32, #tpu.memory_space<vmem>>, vector<1x1x128xf32>
    %181 = vector.shape_cast %180 : vector<1x1x128xf32> to vector<1x128xf32>
    %182 = vector.extract_strided_slice %181 {offsets = [0, 0], sizes = [1, 32], strides = [1, 1]} : vector<1x128xf32> to vector<1x32xf32>
    %183 = vector.broadcast %182 : vector<1x32xf32> to vector<16x32xf32>
    %184 = arith.addf %179, %183 : vector<16x32xf32>
    %c2_72 = arith.constant 2 : index
    %c0_73 = arith.constant 0 : index
    %c0_74 = arith.constant 0 : index
    %185 = vector.load %arg4[%c2_72, %c0_73, %c0_74] : memref<4x32x192xbf16, #tpu.memory_space<vmem>>, vector<1x32x192xbf16>
    %186 = vector.shape_cast %185 : vector<1x32x192xbf16> to vector<32x192xbf16>
    %c6 = arith.constant 6 : index
    %c0_75 = arith.constant 0 : index
    %c0_76 = arith.constant 0 : index
    %187 = vector.load %arg6[%c6, %c0_75, %c0_76] : memref<13x1x128xf32, #tpu.memory_space<vmem>>, vector<1x1x128xf32>
    %188 = vector.shape_cast %187 : vector<1x1x128xf32> to vector<1x128xf32>
    %189 = vector.extract_strided_slice %188 {offsets = [0, 0], sizes = [1, 64], strides = [1, 1]} : vector<1x128xf32> to vector<1x64xf32>
    %190 = arith.truncf %184 : vector<16x32xf32> to vector<16x32xbf16>
    %cst_77 = arith.constant dense<0.000000e+00> : vector<16x192xf32>
    %191 = tpu.matmul %190, %186, %cst_77 {dimension_numbers = #tpu.dot_dimension_numbers<[1], [0], [0], [1], [0, 0, 1, 1], [], []>} : vector<16x32xbf16>, vector<32x192xbf16>, vector<16x192xf32> -> vector<16x192xf32>
    %cst_78 = arith.constant 0.000000e+00 : f32
    %192 = vector.broadcast %cst_78 : f32 to vector<16x64xf32>
    %193 = vector.broadcast %189 : vector<1x64xf32> to vector<16x64xf32>
    %194 = arith.addf %192, %193 : vector<16x64xf32>
    %195 = vector.extract_strided_slice %191 {offsets = [0, 0], sizes = [16, 64], strides = [1, 1]} : vector<16x192xf32> to vector<16x64xf32>
    %c2_i32 = arith.constant 2 : i32
    %196 = tpu.dynamic_rotate %195 by %c2_i32 dim 0 : vector<16x64xf32>, i32 -> vector<16x64xf32>
    %197 = vector.broadcast %69 : vector<16x1xf32> to vector<16x64xf32>
    %198 = arith.mulf %197, %196 : vector<16x64xf32>
    %199 = arith.addf %194, %198 : vector<16x64xf32>
    %200 = vector.extract_strided_slice %191 {offsets = [0, 64], sizes = [16, 64], strides = [1, 1]} : vector<16x192xf32> to vector<16x64xf32>
    %c1_i32_79 = arith.constant 1 : i32
    %201 = tpu.dynamic_rotate %200 by %c1_i32_79 dim 0 : vector<16x64xf32>, i32 -> vector<16x64xf32>
    %202 = vector.broadcast %80 : vector<16x1xf32> to vector<16x64xf32>
    %203 = arith.mulf %202, %201 : vector<16x64xf32>
    %204 = arith.addf %199, %203 : vector<16x64xf32>
    %205 = vector.extract_strided_slice %191 {offsets = [0, 128], sizes = [16, 64], strides = [1, 1]} : vector<16x192xf32> to vector<16x64xf32>
    %206 = arith.addf %204, %205 : vector<16x64xf32>
    %207 = vector.extract_strided_slice %206 {offsets = [0, 0], sizes = [16, 32], strides = [1, 1]} : vector<16x64xf32> to vector<16x32xf32>
    %208 = vector.extract_strided_slice %206 {offsets = [0, 32], sizes = [16, 32], strides = [1, 1]} : vector<16x64xf32> to vector<16x32xf32>
    %209 = arith.negf %208 : vector<16x32xf32>
    %210 = math.exp %209 : vector<16x32xf32>
    %cst_80 = arith.constant 1.000000e+00 : f32
    %211 = vector.broadcast %cst_80 : f32 to vector<16x32xf32>
    %212 = arith.addf %211, %210 : vector<16x32xf32>
    %213 = arith.divf %211, %212 : vector<16x32xf32>
    %214 = arith.mulf %207, %213 : vector<16x32xf32>
    %c4_81 = arith.constant 4 : index
    %c0_82 = arith.constant 0 : index
    %c0_83 = arith.constant 0 : index
    %215 = vector.load %arg3[%c4_81, %c0_82, %c0_83] : memref<8x32x32xbf16, #tpu.memory_space<vmem>>, vector<1x32x32xbf16>
    %216 = vector.shape_cast %215 : vector<1x32x32xbf16> to vector<32x32xbf16>
    %217 = arith.truncf %214 : vector<16x32xf32> to vector<16x32xbf16>
    %cst_84 = arith.constant dense<0.000000e+00> : vector<16x32xf32>
    %218 = tpu.matmul %217, %216, %cst_84 {dimension_numbers = #tpu.dot_dimension_numbers<[1], [0], [0], [1], [0, 0, 1, 1], [], []>} : vector<16x32xbf16>, vector<32x32xbf16>, vector<16x32xf32> -> vector<16x32xf32>
    %c7 = arith.constant 7 : index
    %c0_85 = arith.constant 0 : index
    %c0_86 = arith.constant 0 : index
    %219 = vector.load %arg6[%c7, %c0_85, %c0_86] : memref<13x1x128xf32, #tpu.memory_space<vmem>>, vector<1x1x128xf32>
    %220 = vector.shape_cast %219 : vector<1x1x128xf32> to vector<1x128xf32>
    %221 = vector.extract_strided_slice %220 {offsets = [0, 0], sizes = [1, 32], strides = [1, 1]} : vector<1x128xf32> to vector<1x32xf32>
    %222 = vector.broadcast %221 : vector<1x32xf32> to vector<16x32xf32>
    %223 = arith.addf %218, %222 : vector<16x32xf32>
    %224 = arith.addf %223, %1 : vector<16x32xf32>
    %cst_87 = arith.constant 0.707106769 : f32
    %225 = vector.broadcast %cst_87 : f32 to vector<16x32xf32>
    %226 = arith.mulf %224, %225 : vector<16x32xf32>
    %227 = arith.truncf %226 : vector<16x32xf32> to vector<16x32xbf16>
    %cst_88 = arith.constant dense<0.000000e+00> : vector<16x32xf32>
    %228 = tpu.matmul %227, %174, %cst_88 {dimension_numbers = #tpu.dot_dimension_numbers<[1], [1], [0], [0], [0, 0, 1, 0], [], []>} : vector<16x32xbf16>, vector<32x32xbf16>, vector<16x32xf32> -> vector<16x32xf32>
    %229 = arith.addf %228, %2 : vector<16x32xf32>
    %cst_89 = arith.constant dense<0xFF800000> : vector<16xf32>
    %230 = vector.multi_reduction <maximumf>, %229, %cst_89 [1] : vector<16x32xf32> to vector<16xf32>
    %231 = vector.shape_cast %230 : vector<16xf32> to vector<16x1xf32>
    %232 = vector.broadcast %231 : vector<16x1xf32> to vector<16x32xf32>
    %233 = arith.subf %229, %232 : vector<16x32xf32>
    %234 = math.exp %233 : vector<16x32xf32>
    %cst_90 = arith.constant dense<0.000000e+00> : vector<16xf32>
    %235 = vector.multi_reduction <add>, %234, %cst_90 [1] : vector<16x32xf32> to vector<16xf32>
    %236 = vector.shape_cast %235 : vector<16xf32> to vector<16x1xf32>
    %237 = tpu.reciprocal %236 {approx = true} : vector<16x1xf32> -> vector<16x1xf32>
    %238 = vector.broadcast %237 : vector<16x1xf32> to vector<16x32xf32>
    %239 = arith.mulf %234, %238 : vector<16x32xf32>
    %240 = arith.truncf %239 : vector<16x32xf32> to vector<16x32xbf16>
    %cst_91 = arith.constant dense<0.000000e+00> : vector<16x32xf32>
    %241 = tpu.matmul %240, %175, %cst_91 {dimension_numbers = #tpu.dot_dimension_numbers<[1], [0], [0], [1], [0, 0, 1, 1], [], []>} : vector<16x32xbf16>, vector<32x32xbf16>, vector<16x32xf32> -> vector<16x32xf32>
    %cst_92 = arith.constant 4.000000e+00 : f32
    %242 = vector.broadcast %cst_92 : f32 to vector<16x32xf32>
    %243 = arith.mulf %241, %242 : vector<16x32xf32>
    %244 = arith.addf %243, %214 : vector<16x32xf32>
    %cst_93 = arith.constant 0.707106769 : f32
    %245 = vector.broadcast %cst_93 : f32 to vector<16x32xf32>
    %246 = arith.mulf %244, %245 : vector<16x32xf32>
    %247 = arith.addf %246, %184 : vector<16x32xf32>
    %cst_94 = arith.constant 0.707106769 : f32
    %248 = vector.broadcast %cst_94 : f32 to vector<16x32xf32>
    %249 = arith.mulf %247, %248 : vector<16x32xf32>
    %c5_95 = arith.constant 5 : index
    %c0_96 = arith.constant 0 : index
    %c0_97 = arith.constant 0 : index
    %250 = vector.load %arg3[%c5_95, %c0_96, %c0_97] : memref<8x32x32xbf16, #tpu.memory_space<vmem>>, vector<1x32x32xbf16>
    %251 = vector.shape_cast %250 : vector<1x32x32xbf16> to vector<32x32xbf16>
    %252 = arith.truncf %249 : vector<16x32xf32> to vector<16x32xbf16>
    %cst_98 = arith.constant dense<0.000000e+00> : vector<16x32xf32>
    %253 = tpu.matmul %252, %251, %cst_98 {dimension_numbers = #tpu.dot_dimension_numbers<[1], [0], [0], [1], [0, 0, 1, 1], [], []>} : vector<16x32xbf16>, vector<32x32xbf16>, vector<16x32xf32> -> vector<16x32xf32>
    %c8 = arith.constant 8 : index
    %c0_99 = arith.constant 0 : index
    %c0_100 = arith.constant 0 : index
    %254 = vector.load %arg6[%c8, %c0_99, %c0_100] : memref<13x1x128xf32, #tpu.memory_space<vmem>>, vector<1x1x128xf32>
    %255 = vector.shape_cast %254 : vector<1x1x128xf32> to vector<1x128xf32>
    %256 = vector.extract_strided_slice %255 {offsets = [0, 0], sizes = [1, 32], strides = [1, 1]} : vector<1x128xf32> to vector<1x32xf32>
    %257 = vector.broadcast %256 : vector<1x32xf32> to vector<16x32xf32>
    %258 = arith.addf %253, %257 : vector<16x32xf32>
    %c3_101 = arith.constant 3 : index
    %c0_102 = arith.constant 0 : index
    %c0_103 = arith.constant 0 : index
    %259 = vector.load %arg4[%c3_101, %c0_102, %c0_103] : memref<4x32x192xbf16, #tpu.memory_space<vmem>>, vector<1x32x192xbf16>
    %260 = vector.shape_cast %259 : vector<1x32x192xbf16> to vector<32x192xbf16>
    %c9 = arith.constant 9 : index
    %c0_104 = arith.constant 0 : index
    %c0_105 = arith.constant 0 : index
    %261 = vector.load %arg6[%c9, %c0_104, %c0_105] : memref<13x1x128xf32, #tpu.memory_space<vmem>>, vector<1x1x128xf32>
    %262 = vector.shape_cast %261 : vector<1x1x128xf32> to vector<1x128xf32>
    %263 = vector.extract_strided_slice %262 {offsets = [0, 0], sizes = [1, 64], strides = [1, 1]} : vector<1x128xf32> to vector<1x64xf32>
    %264 = arith.truncf %249 : vector<16x32xf32> to vector<16x32xbf16>
    %cst_106 = arith.constant dense<0.000000e+00> : vector<16x192xf32>
    %265 = tpu.matmul %264, %260, %cst_106 {dimension_numbers = #tpu.dot_dimension_numbers<[1], [0], [0], [1], [0, 0, 1, 1], [], []>} : vector<16x32xbf16>, vector<32x192xbf16>, vector<16x192xf32> -> vector<16x192xf32>
    %cst_107 = arith.constant 0.000000e+00 : f32
    %266 = vector.broadcast %cst_107 : f32 to vector<16x64xf32>
    %267 = vector.broadcast %263 : vector<1x64xf32> to vector<16x64xf32>
    %268 = arith.addf %266, %267 : vector<16x64xf32>
    %269 = vector.extract_strided_slice %265 {offsets = [0, 0], sizes = [16, 64], strides = [1, 1]} : vector<16x192xf32> to vector<16x64xf32>
    %c2_i32_108 = arith.constant 2 : i32
    %270 = tpu.dynamic_rotate %269 by %c2_i32_108 dim 0 : vector<16x64xf32>, i32 -> vector<16x64xf32>
    %271 = vector.broadcast %69 : vector<16x1xf32> to vector<16x64xf32>
    %272 = arith.mulf %271, %270 : vector<16x64xf32>
    %273 = arith.addf %268, %272 : vector<16x64xf32>
    %274 = vector.extract_strided_slice %265 {offsets = [0, 64], sizes = [16, 64], strides = [1, 1]} : vector<16x192xf32> to vector<16x64xf32>
    %c1_i32_109 = arith.constant 1 : i32
    %275 = tpu.dynamic_rotate %274 by %c1_i32_109 dim 0 : vector<16x64xf32>, i32 -> vector<16x64xf32>
    %276 = vector.broadcast %80 : vector<16x1xf32> to vector<16x64xf32>
    %277 = arith.mulf %276, %275 : vector<16x64xf32>
    %278 = arith.addf %273, %277 : vector<16x64xf32>
    %279 = vector.extract_strided_slice %265 {offsets = [0, 128], sizes = [16, 64], strides = [1, 1]} : vector<16x192xf32> to vector<16x64xf32>
    %280 = arith.addf %278, %279 : vector<16x64xf32>
    %281 = vector.extract_strided_slice %280 {offsets = [0, 0], sizes = [16, 32], strides = [1, 1]} : vector<16x64xf32> to vector<16x32xf32>
    %282 = vector.extract_strided_slice %280 {offsets = [0, 32], sizes = [16, 32], strides = [1, 1]} : vector<16x64xf32> to vector<16x32xf32>
    %283 = arith.negf %282 : vector<16x32xf32>
    %284 = math.exp %283 : vector<16x32xf32>
    %cst_110 = arith.constant 1.000000e+00 : f32
    %285 = vector.broadcast %cst_110 : f32 to vector<16x32xf32>
    %286 = arith.addf %285, %284 : vector<16x32xf32>
    %287 = arith.divf %285, %286 : vector<16x32xf32>
    %288 = arith.mulf %281, %287 : vector<16x32xf32>
    %c6_111 = arith.constant 6 : index
    %c0_112 = arith.constant 0 : index
    %c0_113 = arith.constant 0 : index
    %289 = vector.load %arg3[%c6_111, %c0_112, %c0_113] : memref<8x32x32xbf16, #tpu.memory_space<vmem>>, vector<1x32x32xbf16>
    %290 = vector.shape_cast %289 : vector<1x32x32xbf16> to vector<32x32xbf16>
    %291 = arith.truncf %288 : vector<16x32xf32> to vector<16x32xbf16>
    %cst_114 = arith.constant dense<0.000000e+00> : vector<16x32xf32>
    %292 = tpu.matmul %291, %290, %cst_114 {dimension_numbers = #tpu.dot_dimension_numbers<[1], [0], [0], [1], [0, 0, 1, 1], [], []>} : vector<16x32xbf16>, vector<32x32xbf16>, vector<16x32xf32> -> vector<16x32xf32>
    %c10 = arith.constant 10 : index
    %c0_115 = arith.constant 0 : index
    %c0_116 = arith.constant 0 : index
    %293 = vector.load %arg6[%c10, %c0_115, %c0_116] : memref<13x1x128xf32, #tpu.memory_space<vmem>>, vector<1x1x128xf32>
    %294 = vector.shape_cast %293 : vector<1x1x128xf32> to vector<1x128xf32>
    %295 = vector.extract_strided_slice %294 {offsets = [0, 0], sizes = [1, 32], strides = [1, 1]} : vector<1x128xf32> to vector<1x32xf32>
    %296 = vector.broadcast %295 : vector<1x32xf32> to vector<16x32xf32>
    %297 = arith.addf %292, %296 : vector<16x32xf32>
    %298 = arith.addf %297, %1 : vector<16x32xf32>
    %cst_117 = arith.constant 0.707106769 : f32
    %299 = vector.broadcast %cst_117 : f32 to vector<16x32xf32>
    %300 = arith.mulf %298, %299 : vector<16x32xf32>
    %301 = arith.truncf %300 : vector<16x32xf32> to vector<16x32xbf16>
    %cst_118 = arith.constant dense<0.000000e+00> : vector<16x32xf32>
    %302 = tpu.matmul %301, %174, %cst_118 {dimension_numbers = #tpu.dot_dimension_numbers<[1], [1], [0], [0], [0, 0, 1, 0], [], []>} : vector<16x32xbf16>, vector<32x32xbf16>, vector<16x32xf32> -> vector<16x32xf32>
    %303 = arith.addf %302, %2 : vector<16x32xf32>
    %cst_119 = arith.constant dense<0xFF800000> : vector<16xf32>
    %304 = vector.multi_reduction <maximumf>, %303, %cst_119 [1] : vector<16x32xf32> to vector<16xf32>
    %305 = vector.shape_cast %304 : vector<16xf32> to vector<16x1xf32>
    %306 = vector.broadcast %305 : vector<16x1xf32> to vector<16x32xf32>
    %307 = arith.subf %303, %306 : vector<16x32xf32>
    %308 = math.exp %307 : vector<16x32xf32>
    %cst_120 = arith.constant dense<0.000000e+00> : vector<16xf32>
    %309 = vector.multi_reduction <add>, %308, %cst_120 [1] : vector<16x32xf32> to vector<16xf32>
    %310 = vector.shape_cast %309 : vector<16xf32> to vector<16x1xf32>
    %311 = tpu.reciprocal %310 {approx = true} : vector<16x1xf32> -> vector<16x1xf32>
    %312 = vector.broadcast %311 : vector<16x1xf32> to vector<16x32xf32>
    %313 = arith.mulf %308, %312 : vector<16x32xf32>
    %314 = arith.truncf %313 : vector<16x32xf32> to vector<16x32xbf16>
    %cst_121 = arith.constant dense<0.000000e+00> : vector<16x32xf32>
    %315 = tpu.matmul %314, %175, %cst_121 {dimension_numbers = #tpu.dot_dimension_numbers<[1], [0], [0], [1], [0, 0, 1, 1], [], []>} : vector<16x32xbf16>, vector<32x32xbf16>, vector<16x32xf32> -> vector<16x32xf32>
    %cst_122 = arith.constant 4.000000e+00 : f32
    %316 = vector.broadcast %cst_122 : f32 to vector<16x32xf32>
    %317 = arith.mulf %315, %316 : vector<16x32xf32>
    %318 = arith.addf %317, %288 : vector<16x32xf32>
    %cst_123 = arith.constant 0.707106769 : f32
    %319 = vector.broadcast %cst_123 : f32 to vector<16x32xf32>
    %320 = arith.mulf %318, %319 : vector<16x32xf32>
    %321 = arith.addf %320, %258 : vector<16x32xf32>
    %cst_124 = arith.constant 0.707106769 : f32
    %322 = vector.broadcast %cst_124 : f32 to vector<16x32xf32>
    %323 = arith.mulf %321, %322 : vector<16x32xf32>
    %c7_125 = arith.constant 7 : index
    %c0_126 = arith.constant 0 : index
    %c0_127 = arith.constant 0 : index
    %324 = vector.load %arg3[%c7_125, %c0_126, %c0_127] : memref<8x32x32xbf16, #tpu.memory_space<vmem>>, vector<1x32x32xbf16>
    %325 = vector.shape_cast %324 : vector<1x32x32xbf16> to vector<32x32xbf16>
    %326 = arith.truncf %323 : vector<16x32xf32> to vector<16x32xbf16>
    %cst_128 = arith.constant dense<0.000000e+00> : vector<16x32xf32>
    %327 = tpu.matmul %326, %325, %cst_128 {dimension_numbers = #tpu.dot_dimension_numbers<[1], [0], [0], [1], [0, 0, 1, 1], [], []>} : vector<16x32xbf16>, vector<32x32xbf16>, vector<16x32xf32> -> vector<16x32xf32>
    %c11 = arith.constant 11 : index
    %c0_129 = arith.constant 0 : index
    %c0_130 = arith.constant 0 : index
    %328 = vector.load %arg6[%c11, %c0_129, %c0_130] : memref<13x1x128xf32, #tpu.memory_space<vmem>>, vector<1x1x128xf32>
    %329 = vector.shape_cast %328 : vector<1x1x128xf32> to vector<1x128xf32>
    %330 = vector.extract_strided_slice %329 {offsets = [0, 0], sizes = [1, 32], strides = [1, 1]} : vector<1x128xf32> to vector<1x32xf32>
    %331 = vector.broadcast %330 : vector<1x32xf32> to vector<16x32xf32>
    %332 = arith.addf %327, %331 : vector<16x32xf32>
    %c0_131 = arith.constant 0 : index
    %c0_132 = arith.constant 0 : index
    %333 = vector.load %arg5[%c0_131, %c0_132] : memref<32x128xbf16, #tpu.memory_space<vmem>>, vector<32x128xbf16>
    %334 = arith.truncf %332 : vector<16x32xf32> to vector<16x32xbf16>
    %cst_133 = arith.constant dense<0.000000e+00> : vector<16x128xf32>
    %335 = tpu.matmul %334, %333, %cst_133 {dimension_numbers = #tpu.dot_dimension_numbers<[1], [0], [0], [1], [0, 0, 1, 1], [], []>} : vector<16x32xbf16>, vector<32x128xbf16>, vector<16x128xf32> -> vector<16x128xf32>
    %c12 = arith.constant 12 : index
    %c0_134 = arith.constant 0 : index
    %c0_135 = arith.constant 0 : index
    %336 = vector.load %arg6[%c12, %c0_134, %c0_135] : memref<13x1x128xf32, #tpu.memory_space<vmem>>, vector<1x1x128xf32>
    %337 = vector.shape_cast %336 : vector<1x1x128xf32> to vector<1x128xf32>
    %338 = vector.broadcast %337 : vector<1x128xf32> to vector<16x128xf32>
    %339 = arith.addf %335, %338 : vector<16x128xf32>
    %c0_136 = arith.constant 0 : index
    %c0_137 = arith.constant 0 : index
    %340 = vector.load %arg7[%c0_136, %c0_137] : memref<16x128xf32, #tpu.memory_space<vmem>>, vector<16x128xf32>
    tpu.vector_store %arg7[%c0_136, %c0_137], %339 {strides = array<i32>} : memref<16x128xf32, #tpu.memory_space<vmem>>, vector<16x128xf32>,
    return
  }
}

</mosaic_0001>

<bundles_post_ra>
// kernel: tpu_custom_call.1
= control target key start
LH: loop header
LB: loop body
LE: loop exit
PB: predicated region body
PF: predicated region fallthrough
CT: control target
= control target key end

     0   :  { %12 = vsyncpa [#allocation3], 0  ;;  %s2491_s0 = inlined_call_operand.hbm [shape: f32[32,32], index: 0, kind: input, shape index: {}]   ;;  %s2492_s1 = inlined_call_operand.hbm [shape: f32[16,32], index: 1, kind: input, shape index: {}]   ;;  %s2493_s2 = inlined_call_operand.hbm [shape: f32[16,32], index: 2, kind: input, shape index: {}]   ;;  %s2494_s3 = inlined_call_operand.hbm [shape: bf16[8,32,32], index: 3, kind: input, shape index: {}]   ;;  %s2495_s4 = inlined_call_operand.hbm [shape: bf16[4,32,192], index: 4, kind: input, shape index: {}]   ;;  %s2496_s5 = inlined_call_operand.hbm [shape: bf16[32,128], index: 5, kind: input, shape index: {}]   ;;  %s2497_s6 = inlined_call_operand.hbm [shape: f32[13,1,128], index: 6, kind: input, shape index: {}]   ;;  %s2498_s7 = inlined_call_operand.hbm [shape: f32[16,128], index: 7, kind: output, shape index: {}]  }
   0x1   :  { %13 = vsyncpa [#allocation6], 0 }
   0x2   :  { %14 = vsyncpa [#allocation9], 0 }
   0x3   :  { %15 = vsyncpa [#allocation12], 0 }
   0x4   :  { %16 = vsyncpa [#allocation4], 0  ;;  %s34_s26 = sshll.u32 %s2492_s1, 4  ;;  %s2098_s27 = smov [#allocation5]   ;;  %s35_s26 = int_to_ptr.hbm [resolvable:$true] %s34_s26 }
   0x5   :  { %s36_s28 = sshll.u32 %s2098_s27, 4  ;;  %s60_s8 = sshll.u32 %s2494_s3, 4  ;;  %s37_s28 = int_to_ptr.vmem [resolvable:$true] %s36_s28  ;;  %s61_s8 = int_to_ptr.hbm [resolvable:$true] %s60_s8 }
   0x6   :  { %s2099_s9 = smov 128   ;;  %s2100_s10 = smov 8  }
   0x7   :  { %42 = dma.hbm_to_vmem [thread:$0]  %s35_s26, 256, %s37_s28, [#allocation6], %s2099_s9, %s2099_s9, %s2100_s10  }
   0x8   :  { %s2101_s11 = smov [#allocation8]   ;;  %s2102_s13 = smov 64  }
   0x9   :  { %s62_s12 = sshll.u32 %s2101_s11, 4  ;;  %s2103_s1 = smov 4   ;;  %s63_s12 = int_to_ptr.vmem [resolvable:$true] %s62_s12 }
   0xa   :  { %68 = dma.hbm_to_vmem [thread:$0]  %s61_s8, 2048, %s63_s12, [#allocation9], %s2102_s13, %s2102_s13, %s2103_s1  }
   0xb   :  { %s86_s16 = sshll.u32 %s2496_s5, 4  ;;  %s2104_s3 = smov [#allocation11]   ;;  %s87_s16 = int_to_ptr.hbm [resolvable:$true] %s86_s16 }
   0xc   :  { %s88_s17 = sshll.u32 %s2104_s3, 4  ;;  %s21_s20 = sshll.u32 %s2491_s0, 4  ;;  %s89_s17 = int_to_ptr.vmem [resolvable:$true] %s88_s17  ;;  %s22_s20 = int_to_ptr.hbm [resolvable:$true] %s21_s20 }
   0xd   :  { %94 = dma.hbm_to_vmem [thread:$0]  %s87_s16, 256, %s89_s17, [#allocation12], %s2102_s13, %s2102_s13, %s2103_s1  }
   0xe   :  { %s2105_s21 = smov [#allocation2]   ;;  %s47_s25 = sshll.u32 %s2493_s2, 4  ;;  %s48_s25 = int_to_ptr.hbm [resolvable:$true] %s47_s25 }
   0xf   :  { %s23_s22 = sshll.u32 %s2105_s21, 4  ;;  %s73_s0 = sshll.u32 %s2495_s4, 4  ;;  %s24_s22 = int_to_ptr.vmem [resolvable:$true] %s23_s22  ;;  %s74_s0 = int_to_ptr.hbm [resolvable:$true] %s73_s0 }
  0x10   :  { %29 = dma.hbm_to_vmem [thread:$0]  %s22_s20, 512, %s24_s22, [#allocation3], %s2099_s9, %s2099_s9, %s2100_s10  }
  0x11   :  { %s2106_s27 = smov [#allocation7]   ;;  %s2107_s29 = smov [#allocation10]  }
  0x12   :  { %s49_s28 = sshll.u32 %s2106_s27, 4  ;;  %s75_s2 = sshll.u32 %s2107_s29, 4  ;;  %s50_s28 = int_to_ptr.vmem [resolvable:$true] %s49_s28  ;;  %s76_s2 = int_to_ptr.vmem [resolvable:$true] %s75_s2 }
  0x13   :  { %55 = dma.hbm_to_vmem [thread:$0]  %s48_s25, 256, %s50_s28, [#allocation6], %s2099_s9, %s2099_s9, %s2100_s10  }
  0x14   :  { %s99_s11 = sshll.u32 %s2497_s6, 4  ;;  %s2108_s4 = smov [#allocation13]   ;;  %s100_s11 = int_to_ptr.hbm [resolvable:$true] %s99_s11 }
  0x15   :  { %81 = dma.hbm_to_vmem [thread:$0]  %s74_s0, 2048, %s76_s2, [#allocation9], %s2099_s9, %s2099_s9, %s2100_s10  }
  0x16   :  { %s101_s12 = sshll.u32 %s2108_s4, 4  ;;  %s2109_s1 = smov 16   ;;  %s102_s12 = int_to_ptr.vmem [resolvable:$true] %s101_s12 }
  0x17   :  { %s2110_s14 = smov 1  }
  0x18   :  { %107 = dma.hbm_to_vmem [thread:$0]  %s100_s11, 208, %s102_s12, [#allocation12], %s2109_s1, %s2109_s1, %s2110_s14  }
  0x19   :  { %2088 = dma.done.wait [#allocation3], 512  }
  0x1a   :  { %2089 = vsyncadd [#allocation3], 4294966784 }
  0x1b   :  { %2090 = dma.done.wait [#allocation6], 512  }
  0x1c   :  { %2091 = vsyncadd [#allocation6], 4294966784 }
  0x1d   :  { %2092 = dma.done.wait [#allocation9], 4096  }
  0x1e   :  { %2093 = vsyncadd [#allocation9], 4294963200 }
  0x1f   :  { %2094 = dma.done.wait [#allocation12], 464  }
  0x20   :  { %2095 = vsyncadd [#allocation12], 4294966832  ;;  %v1770_v0 = vld [vmem:[#allocation8 + $0x8] sm:$0xff]  ;;  %v1769_v1 = vld [vmem:[#allocation8] sm:$0xff]  ;;  %vm316_vm0 = vcmask 261120   ;;  %v145_v32 = vlaneseq  ;;  %v2111_v48 = vmov 0.0  }
  0x21   :  { %v2191_v2 = vld [vmem:[#allocation2] sm:$0xff]  ;;  %329 = vmatpush.bf16.msra.mxu0 %v1770_v0  ;;  %v2193_v3 = vld [vmem:[#allocation2 + $0x8] sm:$0xff]  ;;  %v2198_v5 = vld [vmem:[#allocation2 + $0x10] sm:$0xff]  ;;  %s2112_s6 = smov 96   ;;  %s1569_s17 = sshll.u32 %s2498_s7, 4  ;;  %s1570_s17 = int_to_ptr.hbm [resolvable:$true] %s1569_s17 }
  0x22   :  { %v298_v4 = vpack.c.bf16 %v2193_v3, %v2191_v2  ;;  %v2200_v6 = vld [vmem:[#allocation2 + $0x18] sm:$0xff]  ;;  %v1613_v8 = vld [vmem:[#allocation10 + $0x10] sm:$0xf]  ;;  %v1773_v10 = vld [vmem:[#allocation10 + $0x14] sm:$0xf]  ;;  %v2218_v33 = vshrl.u32 %v145_v32, 7 }
  0x23   :  { %v299_v7 = vpack.c.bf16 %v2200_v6, %v2198_v5  ;;  %v1774_v9 = vld [vmem:[#allocation10 + $0x14] sm:$0xf0]  ;;  %v1615_v12 = vld [vmem:[#allocation10 + $0x18] sm:$0xf0]  ;;  %v1605_v14 = vld [vmem:[#allocation10] sm:$0xf] }
  0x24   :  { %v1614_v11 = vor.u32 %v1774_v9, %v1613_v8  ;;  %v1618_v13 = vor.u32 %v1773_v10, %v1615_v12  ;;  %v1772_v15 = vld [vmem:[#allocation10 + $0x4] sm:$0xf0]  ;;  %v1771_v16 = vld [vmem:[#allocation10 + $0x4] sm:$0xf]  ;;  %v1607_v18 = vld [vmem:[#allocation10 + $0x8] sm:$0xf0] }
  0x25   :  { %330 = vmatpush.bf16.msra.mxu0 %v1769_v1  ;;  %v1606_v17 = vor.u32 %v1772_v15, %v1605_v14  ;;  %v1610_v19 = vor.u32 %v1771_v16, %v1607_v18  ;;  %v1819_v21 = vld [vmem:[#allocation13] ss:$0 sm:$0xff]  ;;  %vm422_vm1 = vcmp.lt.s32.totalorder %v2218_v33, 1  ;;  %v154_v43 = vand.u32 15, %v2218_v33  ;;  %v1820_v54 = vld [vmem:[#allocation13 + $0x1] ss:$0 sm:$0xff] }
  0x26   :  { %382 = vmatpush.bf16.msra.mxu1 %v1614_v11  ;;  %401 = vmatpush.bf16.msra.mxu2 %v1618_v13  ;;  %v2234_v47 = vadd.s32 8, %v2218_v33  ;;  %v148_v51 = vadd.s32 16, %v2218_v33  ;;  %vm459_vm3 = vcmp.lt.s32.totalorder %v2218_v33, 7  ;;  %v149_v11 = vadd.s32 24, %v2218_v33 }
  0x27   :  { %v198_v44 = vadd.s32 4294967295, %v154_v43 }
  0x28   :  { %1601 = vmatmul.msk.bf16.vlgmr.msra.gmra.mxu0 %vm316_vm0, %v298_v4  ;;  %v161_v53 = vand.u32 15, %v2234_v47  ;;  %v168_v55 = vand.u32 15, %v148_v51 }
  0x29   :  { %vm202_vm2 = vcmp.ge.s32.totalorder %v198_v44, 0 }
  0x2a   :  { %383 = vmatpush.bf16.msra.mxu1 %v1606_v17  ;;  %402 = vmatpush.bf16.msra.mxu2 %v1610_v19  ;;  %v2237_v49 = vsel %vm202_vm2, 1.0, %v2111_v48  ;;  %v223_v59 = vadd.s32 1, %v161_v53  ;;  %v200_v63 = vadd.s32 4294967295, %v168_v55  ;;  %v175_v19 = vand.u32 15, %v149_v11 }
  0x2c   :  { %vm231_vm4 = vcmp.lt.s32.totalorder %v223_v59, 16  ;;  %vm204_vm5 = vcmp.ge.s32.totalorder %v200_v63, 0 }
  0x2d   :  { %v2253_v9 = vsel %vm231_vm4, 1.0, %v2111_v48  ;;  %v2257_v13 = vsel %vm204_vm5, 1.0, %v2111_v48 }
  0x38   :  { %1602 = vmatmul.msk.bf16.gmra.mxu0 %vm316_vm0, %v299_v7 }
  0xa5   :  { %v332_v20 = vpop.f32.mrf.mxu0 }
  0xa6   :  { %v333_v23 = vadd.f32 %v1819_v21, %v332_v20 }
  0xad   :  { %v334_v22 = vpop.f32.mrf.mxu0 }
  0xae   :  { %v335_v24 = vadd.f32 %v1819_v21, %v334_v22 }
  0xb0   :  { %v2205_v25 = vpack.c.bf16 %v335_v24, %v333_v23 }
  0xb2   :  { %1619 = vmatmul.msk.bf16.vlgmr.msra.gmra.mxu1 %vm316_vm0, %v2205_v25  ;;  %1621 = vmatmul.msk.bf16.vlgmr.msra.gmra.mxu2 %vm316_vm0, %v2205_v25 }
  0xb5   :  { %v337_v26 = vpop.f32.mrf.mxu0 }
  0xb6   :  { %v338_v28 = vadd.f32 %v1819_v21, %v337_v26  ;;  %v225_v26 = vadd.s32 1, %v175_v19 }
  0xb8   :  { %vm233_vm6 = vcmp.lt.s32.totalorder %v225_v26, 16 }
  0xbd   :  { %v339_v27 = vpop.f32.mrf.mxu0 }
  0xbe   :  { %v340_v29 = vadd.f32 %v1819_v21, %v339_v27 }
  0xc0   :  { %v2211_v30 = vpack.c.bf16 %v340_v29, %v338_v28 }
  0xc2   :  { %1620 = vmatmul.msk.bf16.gmra.mxu1 %vm316_vm0, %v2211_v30  ;;  %1622 = vmatmul.msk.bf16.gmra.mxu2 %vm316_vm0, %v2211_v30 }
 0x12f   :  { %v385_v31 = vpop.f32.mrf.mxu1 }
 0x130   :  { %439 = vrot.lane.b32.xlu0 %v385_v31, %s2102_s13  ;;  %v418_v35 = vrot.slane %v385_v31, 7 }
 0x135   :  { %v404_v42 = vpop.f32.mrf.mxu2 }
 0x136   :  { %v455_v60 = vrot.slane %v404_v42, 1 }
 0x137   :  { %v387_v34 = vpop.f32.mrf.mxu1 }
 0x138   :  { %v419_v36 = vrot.slane %v387_v34, 7  ;;  %441 = vrot.lane.b32.xlu0 %v387_v34, %s2102_s13 }
 0x13a   :  { %v425_v37 = vsel %vm422_vm1, %v418_v35, %v419_v36 }
 0x13b   :  { %v432_v10 = vadd.f32 %v1820_v54, %v425_v37 }
 0x13d   :  { %v406_v46 = vpop.f32.mrf.mxu2 }
 0x13e   :  { %v456_v56 = vrot.slane %v406_v46, 1 }
 0x13f   :  { %v2224_v38 = vpop.f32.mrf.mxu1 }
 0x140   :  { %v420_v39 = vrot.slane %v2224_v38, 7  ;;  %443 = vrot.lane.b32.xlu1 %v2224_v38, %s2102_s13  ;;  %v462_v1 = vsel %vm459_vm3, %v455_v60, %v456_v56 }
 0x142   :  { %v424_v40 = vsel %vm422_vm1, %v419_v36, %v420_v39 }
 0x143   :  { %v429_v18 = vmul.f32 %v2257_v13, %v424_v40  ;;  %v2274_v40 = vsel %vm233_vm6, 1.0, %v2111_v48 }
 0x145   :  { %v409_v57 = vpop.f32.mrf.mxu2  ;;  %v433_v24 = vadd.f32 %v1820_v54, %v429_v18 }
 0x146   :  { %v457_v0 = vrot.slane %v409_v57, 1 }
 0x147   :  { %v392_v41 = vpop.f32.mrf.mxu1 }
 0x148   :  { %445 = vrot.lane.b32.xlu1 %v392_v41, %s2102_s13  ;;  %v421_v45 = vrot.slane %v392_v41, 7  ;;  %v461_v8 = vsel %vm459_vm3, %v456_v56, %v457_v0 }
 0x149   :  { %v465_v14 = vmul.f32 %v2253_v9, %v461_v8 }
 0x14a   :  { %v426_v50 = vsel %vm422_vm1, %v421_v45, %v418_v35  ;;  %v423_v32 = vsel %vm422_vm1, %v420_v39, %v421_v45 }
 0x14b   :  { %v427_v52 = vmul.f32 %v2237_v49, %v426_v50  ;;  %v434_v41 = vadd.f32 %v1820_v54, %v423_v32 }
 0x14d   :  { %v431_v58 = vadd.f32 %v1820_v54, %v427_v52  ;;  %v411_v16 = vpop.f32.mrf.mxu2 }
 0x14e   :  { %v458_v22 = vrot.slane %v411_v16, 1 }
 0x150   :  { %v460_v29 = vsel %vm459_vm3, %v457_v0, %v458_v22  ;;  %v463_v37 = vsel %vm459_vm3, %v458_v22, %v455_v60 }
 0x151   :  { %v467_v44 = vmul.f32 %v2274_v40, %v463_v37 }
 0x1a2   :  { %v440_v61 = vpop.permute.xlu0 %439 }
 0x1a3   :  { %v451_v62 = vadd.f32 %v440_v61, %v431_v58 }
 0x1a5   :  { %v2247_v4 = vadd.f32 %v462_v1, %v451_v62 }
 0x1a7   :  { %v1623_v7 = vmul.f32 -1.442695, %v2247_v4 }
 0x1a9   :  { %1832 = vpow2.f32 %v1623_v7 }
 0x1aa   :  { %v442_v12 = vpop.permute.xlu0 %441 }
 0x1ab   :  { %v452_v15 = vadd.f32 %v442_v12, %v432_v10 }
 0x1ad   :  { %v2260_v17 = vadd.f32 %v465_v14, %v452_v15 }
 0x1af   :  { %v1833_v20 = vpop.eup %1832  ;;  %v1624_v21 = vmul.f32 -1.442695, %v2260_v17 }
 0x1b0   :  { %v484_v23 = vadd.f32 1.0, %v1833_v20 }
 0x1b1   :  { %1834 = vpow2.f32 %v1624_v21 }
 0x1b2   :  { %1836 = vrcp.f32 %v484_v23  ;;  %v444_v27 = vpop.permute.xlu1 %443  ;;  %v499_v45 = vand.u32 2147483648, %v484_v23  ;;  %v497_v52 = vand.u32 2147483647, %v484_v23  ;;  %vm493_vm8 = vweird.f32 %v484_v23 }
 0x1b3   :  { %v453_v28 = vadd.f32 %v444_v27, %v433_v24 }
 0x1b4   :  { %v500_v58 = vor.u32 1.1754944e-38, %v499_v45  ;;  %vm498_vm10 = vcmp.eq.f32.partialorder %v497_v52, 8.507059e+37  ;;  %v1649_v45 = vld [vmem:[#allocation10 + $0x38] sm:$0xf0]  ;;  %v1639_v52 = vld [vmem:[#allocation10 + $0x20] sm:$0xf] }
 0x1b5   :  { %v2266_v31 = vadd.f32 %v460_v29, %v453_v28 }
 0x1b7   :  { %v1835_v34 = vpop.eup %1834  ;;  %v1625_v35 = vmul.f32 -1.442695, %v2266_v31 }
 0x1b8   :  { %v1837_v36 = vpop.eup %1836  ;;  %v485_v38 = vadd.f32 1.0, %v1835_v34 }
 0x1b9   :  { %1838 = vpow2.f32 %v1625_v35  ;;  %v489_v42 = vmul.f32 %v1837_v36, %v484_v23  ;;  %vm494_vm7 = vweird.f32 %v1837_v36 }
 0x1ba   :  { %1840 = vrcp.f32 %v485_v38  ;;  %v446_v43 = vpop.permute.xlu1 %445  ;;  %vm495_vm9 = vmor %vm493_vm8, %vm494_vm7  ;;  %v514_v63 = vand.u32 2147483648, %v485_v38  ;;  %v512_v1 = vand.u32 2147483647, %v485_v38  ;;  %vm508_vm12 = vweird.f32 %v485_v38 }
 0x1bb   :  { %v454_v46 = vadd.f32 %v446_v43, %v434_v41  ;;  %v490_v39 = vsub.f32 1.0, %v489_v42  ;;  %v1647_v42 = vld [vmem:[#allocation10 + $0x30] sm:$0xf]  ;;  %v1780_v43 = vld [vmem:[#allocation10 + $0x34] sm:$0xf0] }
 0x1bc   :  { %v515_v12 = vor.u32 1.1754944e-38, %v514_v63  ;;  %vm513_vm14 = vcmp.eq.f32.partialorder %v512_v1, 8.507059e+37 }
 0x1bd   :  { %v2277_v50 = vadd.f32 %v467_v44, %v454_v46  ;;  %v491_v51 = vmul.f32 %v1837_v36, %v490_v39  ;;  %v1779_v44 = vld [vmem:[#allocation10 + $0x34] sm:$0xf]  ;;  %v1776_v46 = vld [vmem:[#allocation8 + $0x18] sm:$0xff]  ;;  %v1648_v39 = vor.u32 %v1780_v43, %v1647_v42  ;;  %v1785_v42 = vld [vmem:[#allocation10 + $0x44] sm:$0xf] }
 0x1be   :  { %612 = vmatpush.bf16.msra.mxu3 %v1776_v46  ;;  %v1684_v43 = vld [vmem:[#allocation10 + $0x48] sm:$0xf0] }
 0x1bf   :  { %v1839_v53 = vpop.eup %1838  ;;  %v1626_v55 = vmul.f32 -1.442695, %v2277_v50  ;;  %v492_v56 = vadd.f32 %v1837_v36, %v491_v51  ;;  %v1652_v51 = vor.u32 %v1779_v44, %v1649_v45  ;;  %658 = vmatpush.bf16.msrb.mxu0 %v1648_v39  ;;  %v1687_v44 = vor.u32 %v1785_v42, %v1684_v43 }
 0x1c0   :  { %v1841_v57 = vpop.eup %1840  ;;  %v486_v54 = vadd.f32 1.0, %v1839_v53  ;;  %v1778_v53 = vld [vmem:[#allocation10 + $0x24] sm:$0xf0] }
 0x1c1   :  { %1842 = vpow2.f32 %v1626_v55  ;;  %v496_v59 = vsel %vm495_vm9, %v1837_v36, %v492_v56  ;;  %v504_v60 = vmul.f32 %v1841_v57, %v485_v38  ;;  %vm509_vm11 = vweird.f32 %v1841_v57  ;;  %677 = vmatpush.bf16.msrb.mxu1 %v1652_v51  ;;  %v1777_v55 = vld [vmem:[#allocation10 + $0x24] sm:$0xf]  ;;  %v1775_v56 = vld [vmem:[#allocation8 + $0x10] sm:$0xff] }
 0x1c2   :  { %1844 = vrcp.f32 %v486_v54  ;;  %v501_v61 = vsel %vm498_vm10, %v500_v58, %v496_v59  ;;  %vm510_vm13 = vmor %vm508_vm12, %vm509_vm11  ;;  %v529_v19 = vand.u32 2147483648, %v486_v54  ;;  %v527_v21 = vand.u32 2147483647, %v486_v54  ;;  %613 = vmatpush.bf16.msra.mxu3 %v1775_v56 }
 0x1c3   :  { %552 = vrot.lane.b32.xlu2 %v501_v61, %s2112_s6  ;;  %v505_v62 = vsub.f32 1.0, %v504_v60  ;;  %vm523_vm2 = vweird.f32 %v486_v54 }
 0x1c4   :  { %v530_v24 = vor.u32 1.1754944e-38, %v529_v19  ;;  %vm528_vm5 = vcmp.eq.f32.partialorder %v527_v21, 8.507059e+37 }
 0x1c5   :  { %v506_v0 = vmul.f32 %v1841_v57, %v505_v62 }
 0x1c7   :  { %v1843_v7 = vpop.eup %1842  ;;  %v507_v8 = vadd.f32 %v1841_v57, %v506_v0 }
 0x1c8   :  { %v1845_v10 = vpop.eup %1844  ;;  %v487_v11 = vadd.f32 1.0, %v1843_v7 }
 0x1c9   :  { %v511_v14 = vsel %vm510_vm13, %v1841_v57, %v507_v8  ;;  %v519_v15 = vmul.f32 %v1845_v10, %v486_v54  ;;  %vm524_vm15 = vweird.f32 %v1845_v10  ;;  %v1640_v57 = vor.u32 %v1778_v53, %v1639_v52  ;;  %v1641_v54 = vld [vmem:[#allocation10 + $0x28] sm:$0xf0]  ;;  %v1784_v8 = vld [vmem:[#allocation8 + $0x38] sm:$0xff] }
 0x1ca   :  { %1846 = vrcp.f32 %v487_v11  ;;  %v516_v16 = vsel %vm513_vm14, %v515_v12, %v511_v14  ;;  %vm525_vm4 = vmor %vm523_vm2, %vm524_vm15  ;;  %v544_v32 = vand.u32 2147483648, %v487_v11  ;;  %v542_v35 = vand.u32 2147483647, %v487_v11  ;;  %933 = vmatpush.bf16.msrb.mxu3 %v1784_v8  ;;  %v1788_v12 = vld [vmem:[#allocation10 + $0x54] sm:$0xf0] }
 0x1cb   :  { %554 = vrot.lane.b32.xlu2 %v516_v16, %s2112_s6  ;;  %v520_v18 = vsub.f32 1.0, %v519_v15  ;;  %vm538_vm7 = vweird.f32 %v487_v11  ;;  %v1644_v58 = vor.u32 %v1777_v55, %v1641_v54  ;;  %659 = vmatpush.bf16.msrb.mxu0 %v1640_v57  ;;  %v1786_v15 = vld [vmem:[#allocation10 + $0x44] sm:$0xf0]  ;;  %v1822_v54 = vld [vmem:[#allocation13 + $0x5] ss:$0 sm:$0xff] }
 0x1cc   :  { %v545_v37 = vor.u32 1.1754944e-38, %v544_v32  ;;  %vm543_vm9 = vcmp.eq.f32.partialorder %v542_v35, 8.507059e+37 }
 0x1cd   :  { %v521_v20 = vmul.f32 %v1845_v10, %v520_v18  ;;  %678 = vmatpush.bf16.msrb.mxu1 %v1644_v58 }
 0x1cf   :  { %v522_v22 = vadd.f32 %v1845_v10, %v521_v20 }
 0x1d0   :  { %v1847_v23 = vpop.eup %1846 }
 0x1d1   :  { %v526_v26 = vsel %vm525_vm4, %v1845_v10, %v522_v22  ;;  %v534_v27 = vmul.f32 %v1847_v23, %v487_v11  ;;  %vm539_vm6 = vweird.f32 %v1847_v23  ;;  %v1783_v11 = vld [vmem:[#allocation8 + $0x30] sm:$0xff] }
 0x1d2   :  { %v531_v28 = vsel %vm528_vm5, %v530_v24, %v526_v26  ;;  %vm540_vm8 = vmor %vm538_vm7, %vm539_vm6  ;;  %934 = vmatpush.bf16.msrb.mxu3 %v1783_v11  ;;  %v2298_v26 = vld [vmem:[#allocation5] sm:$0xff] }
 0x1d3   :  { %556 = vrot.lane.b32.xlu0 %v531_v28, %s2112_s6  ;;  %v535_v29 = vsub.f32 1.0, %v534_v27  ;;  %v2300_v27 = vld [vmem:[#allocation5 + $0x8] sm:$0xff] }
 0x1d5   :  { %v536_v34 = vmul.f32 %v1847_v23, %v535_v29 }
 0x1d7   :  { %v537_v36 = vadd.f32 %v1847_v23, %v536_v34 }
 0x1d9   :  { %v541_v38 = vsel %vm540_vm8, %v1847_v23, %v537_v36  ;;  %v1787_v36 = vld [vmem:[#allocation10 + $0x54] sm:$0xf] }
 0x1da   :  { %v546_v41 = vsel %vm543_vm9, %v545_v37, %v541_v38  ;;  %v1692_v37 = vld [vmem:[#allocation10 + $0x58] sm:$0xf0] }
 0x1db   :  { %558 = vrot.lane.b32.xlu1 %v546_v41, %s2112_s6  ;;  %v1695_v38 = vor.u32 %v1787_v36, %v1692_v37 }
 0x1dd   :  { %992 = vmatpush.bf16.msra.mxu0 %v1695_v38 }
 0x1e1   :  { %993 = vmatpush.bf16.msra.mxu0 %v1687_v44 }
 0x21d   :  { %v553_v59 = vpop.permute.xlu2 %552 }
 0x21e   :  { %v564_v60 = vmul.f32 %v553_v59, %v2247_v4  ;;  %v1690_v4 = vld [vmem:[#allocation10 + $0x50] sm:$0xf] }
 0x21f   :  { %v1691_v14 = vor.u32 %v1788_v12, %v1690_v4 }
 0x220   :  { %v568_v62 = vadd.f32 %v564_v60, %v2191_v2  ;;  %v1682_v2 = vld [vmem:[#allocation10 + $0x40] sm:$0xf] }
 0x222   :  { %v572_v1 = vmul.f32 0.70710677, %v568_v62 }
 0x225   :  { %v555_v61 = vpop.permute.xlu2 %554 }
 0x226   :  { %v565_v63 = vmul.f32 %v555_v61, %v2260_v17 }
 0x228   :  { %v569_v0 = vadd.f32 %v565_v63, %v2193_v3  ;;  %v1683_v3 = vor.u32 %v1786_v15, %v1682_v2 }
 0x22a   :  { %v573_v7 = vmul.f32 0.70710677, %v569_v0 }
 0x22c   :  { %v581_v10 = vpack.c.bf16 %v573_v7, %v572_v1 }
 0x22e   :  { %1635 = vmatmul.msk.bf16.vlgmr.msra.gmra.mxu3 %vm316_vm0, %v581_v10  ;;  %1653 = vmatmul.msk.bf16.vlgmr.msrb.gmra.mxu0 %vm316_vm0, %v581_v10 }
 0x22f   :  { %1655 = vmatmul.msk.bf16.vlgmr.msrb.gmra.mxu1 %vm316_vm0, %v581_v10  ;;  %978 = vmatpush.bf16.msra.mxu3 %v1691_v14 }
 0x233   :  { %979 = vmatpush.bf16.msra.mxu3 %v1683_v3 }
 0x245   :  { %v557_v17 = vpop.permute.xlu0 %556 }
 0x246   :  { %v566_v16 = vmul.f32 %v557_v17, %v2266_v31 }
 0x248   :  { %v570_v19 = vadd.f32 %v566_v16, %v2198_v5  ;;  %v906_v5 = vpack.c.bf16 %v2300_v27, %v2298_v26 }
 0x24a   :  { %v574_v22 = vmul.f32 0.70710677, %v570_v19 }
 0x24d   :  { %v559_v18 = vpop.permute.xlu1 %558 }
 0x24e   :  { %v567_v20 = vmul.f32 %v559_v18, %v2277_v50  ;;  %v2308_v50 = vld [vmem:[#allocation13 + $0x3] ss:$0 sm:$0xff] }
 0x250   :  { %v571_v21 = vadd.f32 %v567_v20, %v2200_v6 }
 0x252   :  { %v575_v23 = vmul.f32 0.70710677, %v571_v21 }
 0x254   :  { %v582_v24 = vpack.c.bf16 %v575_v23, %v574_v22 }
 0x256   :  { %1636 = vmatmul.msk.bf16.gmra.mxu3 %vm316_vm0, %v582_v24  ;;  %1654 = vmatmul.msk.bf16.gmra.mxu0 %vm316_vm0, %v582_v24 }
 0x257   :  { %1656 = vmatmul.msk.bf16.gmra.mxu1 %vm316_vm0, %v582_v24 }
 0x266   :  { %1679 = vmatmul.msk.bf16.vlgmr.msrb.gmra.mxu3 %vm316_vm0, %v906_v5 }
 0x267   :  { %1179 = vmatpush.bf16.msrb.mxu3 %v2211_v30 }
 0x26b   :  { %1180 = vmatpush.bf16.msrb.mxu3 %v2205_v25 }
 0x2ab   :  { %v661_v6 = vpop.f32.mrf.mxu0 }
 0x2ac   :  { %714 = vrot.lane.b32.xlu2 %v661_v6, %s2102_s13  ;;  %v694_v28 = vrot.slane %v661_v6, 7  ;;  %v680_v61 = vpop.f32.mrf.mxu1 }
 0x2ad   :  { %v730_v10 = vrot.slane %v680_v61, 1 }
 0x2b1   :  { %v2316_v35 = vpop.f32.mrf.mxu3 }
 0x2b3   :  { %v663_v31 = vpop.f32.mrf.mxu0 }
 0x2b4   :  { %v695_v29 = vrot.slane %v663_v31, 7  ;;  %716 = vrot.lane.b32.xlu0 %v663_v31, %s2102_s13  ;;  %v682_v0 = vpop.f32.mrf.mxu1 }
 0x2b5   :  { %v731_v7 = vrot.slane %v682_v0, 1 }
 0x2b6   :  { %v700_v32 = vsel %vm422_vm1, %v694_v28, %v695_v29 }
 0x2b7   :  { %v2314_v34 = vadd.f32 %v2308_v50, %v700_v32  ;;  %v736_v12 = vsel %vm459_vm3, %v730_v10, %v731_v7 }
 0x2b9   :  { %v2318_v41 = vpop.f32.mrf.mxu3 }
 0x2d3   :  { %v666_v46 = vpop.f32.mrf.mxu0 }
 0x2d4   :  { %v696_v39 = vrot.slane %v666_v46, 7  ;;  %718 = vrot.lane.b32.xlu1 %v666_v46, %s2102_s13  ;;  %v685_v16 = vpop.f32.mrf.mxu1 }
 0x2d5   :  { %v732_v19 = vrot.slane %v685_v16, 1 }
 0x2d6   :  { %v699_v45 = vsel %vm422_vm1, %v695_v29, %v696_v39 }
 0x2d7   :  { %v704_v51 = vmul.f32 %v2257_v13, %v699_v45  ;;  %v735_v24 = vsel %vm459_vm3, %v731_v7, %v732_v19 }
 0x2d8   :  { %v739_v32 = vmul.f32 %v2253_v9, %v735_v24 }
 0x2d9   :  { %v2324_v52 = vpop.f32.mrf.mxu3  ;;  %v2327_v53 = vadd.f32 %v2308_v50, %v704_v51 }
 0x2db   :  { %v668_v55 = vpop.f32.mrf.mxu0 }
 0x2dc   :  { %720 = vrot.lane.b32.xlu2 %v668_v55, %s2102_s13  ;;  %v697_v62 = vrot.slane %v668_v55, 7  ;;  %v687_v37 = vpop.f32.mrf.mxu1 }
 0x2dd   :  { %v733_v38 = vrot.slane %v687_v37, 1 }
 0x2de   :  { %v701_v63 = vsel %vm422_vm1, %v697_v62, %v694_v28  ;;  %v698_v42 = vsel %vm422_vm1, %v696_v39, %v697_v62 }
 0x2df   :  { %v702_v1 = vmul.f32 %v2237_v49, %v701_v63  ;;  %v737_v43 = vsel %vm459_vm3, %v733_v38, %v730_v10  ;;  %v709_v44 = vadd.f32 %v2308_v50, %v698_v42  ;;  %v734_v10 = vsel %vm459_vm3, %v732_v19, %v733_v38 }
 0x2e0   :  { %v741_v45 = vmul.f32 %v2274_v40, %v737_v43 }
 0x2e1   :  { %v2330_v56 = vpop.f32.mrf.mxu3  ;;  %v706_v8 = vadd.f32 %v2308_v50, %v702_v1 }
 0x2e9   :  { %v936_v57 = vpop.f32.mrf.mxu3 }
 0x2ea   :  { %v2332_v59 = vadd.f32 %v1822_v54, %v936_v57 }
 0x2f1   :  { %v938_v58 = vpop.f32.mrf.mxu3 }
 0x2f2   :  { %v2334_v60 = vadd.f32 %v1822_v54, %v938_v58 }
 0x2f4   :  { %v948_v13 = vpack.c.bf16 %v2334_v60, %v2332_v59 }
 0x2f6   :  { %1696 = vmatmul.msk.bf16.vlgmr.msra.gmra.mxu3 %vm316_vm0, %v948_v13  ;;  %1697 = vmatmul.msk.bf16.vlgmr.msra.gmra.mxu0 %vm316_vm0, %v948_v13 }
 0x306   :  { %v715_v11 = vpop.permute.xlu2 %714 }
 0x307   :  { %v726_v4 = vadd.f32 %v715_v11, %v706_v8 }
 0x309   :  { %v2346_v14 = vadd.f32 %v736_v12, %v726_v4 }
 0x30b   :  { %v1657_v2 = vmul.f32 -1.442695, %v2346_v14 }
 0x30d   :  { %1848 = vpow2.f32 %v1657_v2 }
 0x313   :  { %v1849_v15 = vpop.eup %1848 }
 0x314   :  { %v758_v3 = vadd.f32 1.0, %v1849_v15 }
 0x316   :  { %1850 = vrcp.f32 %v758_v3  ;;  %v773_v20 = vand.u32 2147483648, %v758_v3  ;;  %v771_v22 = vand.u32 2147483647, %v758_v3  ;;  %vm767_vm11 = vweird.f32 %v758_v3 }
 0x318   :  { %v774_v5 = vor.u32 1.1754944e-38, %v773_v20  ;;  %vm772_vm13 = vcmp.eq.f32.partialorder %v771_v22, 8.507059e+37 }
 0x31c   :  { %v1851_v17 = vpop.eup %1850 }
 0x31d   :  { %v763_v49 = vmul.f32 %v1851_v17, %v758_v3  ;;  %vm768_vm10 = vweird.f32 %v1851_v17 }
 0x31e   :  { %vm769_vm12 = vmor %vm767_vm11, %vm768_vm10 }
 0x31f   :  { %v764_v18 = vsub.f32 1.0, %v763_v49 }
 0x321   :  { %v765_v21 = vmul.f32 %v1851_v17, %v764_v18 }
 0x323   :  { %v766_v23 = vadd.f32 %v1851_v17, %v765_v21 }
 0x325   :  { %v770_v6 = vsel %vm769_vm12, %v1851_v17, %v766_v23 }
 0x326   :  { %v717_v31 = vpop.permute.xlu0 %716  ;;  %v775_v28 = vsel %vm772_vm13, %v774_v5, %v770_v6 }
 0x327   :  { %v727_v29 = vadd.f32 %v717_v31, %v2314_v34  ;;  %826 = vrot.lane.b32.xlu2 %v775_v28, %s2112_s6 }
 0x329   :  { %v2354_v36 = vadd.f32 %v739_v32, %v727_v29 }
 0x32b   :  { %v1658_v40 = vmul.f32 -1.442695, %v2354_v36 }
 0x336   :  { %v721_v46 = vpop.permute.xlu2 %720 }
 0x337   :  { %v729_v34 = vadd.f32 %v721_v46, %v709_v44  ;;  %v1782_v46 = vld [vmem:[#allocation8 + $0x28] sm:$0xff] }
 0x338   :  { %886 = vmatpush.bf16.msrb.mxu2 %v1782_v46 }
 0x339   :  { %v2362_v51 = vadd.f32 %v741_v45, %v729_v34  ;;  %v1781_v45 = vld [vmem:[#allocation8 + $0x20] sm:$0xff]  ;;  %v250_v34 = vand.u32 7, %v2218_v33 }
 0x33b   :  { %v1660_v9 = vmul.f32 -1.442695, %v2362_v51 }
 0x33c   :  { %887 = vmatpush.bf16.msrb.mxu2 %v1781_v45 }
 0x33d   :  { %1852 = vpow2.f32 %v1660_v9  ;;  %v257_v9 = vand.u32 7, %v2234_v47 }
 0x343   :  { %v1853_v55 = vpop.eup %1852 }
 0x344   :  { %v761_v57 = vadd.f32 1.0, %v1853_v55  ;;  %v270_v55 = vadd.s32 4294967294, %v250_v34 }
 0x346   :  { %1854 = vrcp.f32 %v761_v57  ;;  %v818_v13 = vand.u32 2147483648, %v761_v57  ;;  %v719_v61 = vpop.permute.xlu1 %718  ;;  %v816_v50 = vand.u32 2147483647, %v761_v57  ;;  %vm812_vm15 = vweird.f32 %v761_v57 }
 0x347   :  { %v728_v0 = vadd.f32 %v719_v61, %v2327_v53  ;;  %1856 = vpow2.f32 %v1658_v40  ;;  %vm272_vm12 = vcmp.ge.s32.totalorder %v270_v55, 0  ;;  %v1821_v61 = vld [vmem:[#allocation13 + $0x2] ss:$0 sm:$0xff] }
 0x348   :  { %v819_v1 = vor.u32 1.1754944e-38, %v818_v13  ;;  %vm817_vm4 = vcmp.eq.f32.partialorder %v816_v50, 8.507059e+37  ;;  %v282_v13 = vadd.s32 4294967295, %v250_v34  ;;  %v2382_v40 = vsel %vm272_vm12, 1.0, %v2111_v48 }
 0x349   :  { %v2370_v11 = vadd.f32 %v734_v10, %v728_v0  ;;  %v618_v10 = vadd.f32 %v1821_v61, %v2318_v41 }
 0x34b   :  { %v1659_v4 = vmul.f32 -1.442695, %v2370_v11 }
 0x34c   :  { %v1855_v54 = vpop.eup %1854 }
 0x34d   :  { %v808_v58 = vmul.f32 %v1855_v54, %v761_v57  ;;  %vm813_vm14 = vweird.f32 %v1855_v54  ;;  %v1857_v12 = vpop.eup %1856  ;;  %1858 = vpow2.f32 %v1659_v4  ;;  %v271_v57 = vadd.s32 4294967294, %v257_v9  ;;  %v1824_v4 = vld [vmem:[#allocation13 + $0x6] ss:$0 sm:$0xff] }
 0x34e   :  { %vm814_vm2 = vmor %vm812_vm15, %vm813_vm14  ;;  %v759_v2 = vadd.f32 1.0, %v1857_v12  ;;  %vm1006_vm14 = vcmp.lt.s32.totalorder %v2218_v33, 2  ;;  %vm284_vm15 = vcmp.ge.s32.totalorder %v282_v13, 0 }
 0x34f   :  { %v809_v39 = vsub.f32 1.0, %v808_v58  ;;  %vm273_vm13 = vcmp.ge.s32.totalorder %v271_v57, 0 }
 0x350   :  { %1860 = vrcp.f32 %v759_v2  ;;  %v788_v23 = vand.u32 2147483648, %v759_v2  ;;  %vm782_vm5 = vweird.f32 %v759_v2  ;;  %v786_v24 = vand.u32 2147483647, %v759_v2 }
 0x351   :  { %v810_v62 = vmul.f32 %v1855_v54, %v809_v39  ;;  %v2385_v47 = vsel %vm273_vm13, 1.0, %v2111_v48 }
 0x352   :  { %v789_v31 = vor.u32 1.1754944e-38, %v788_v23  ;;  %vm787_vm7 = vcmp.eq.f32.partialorder %v786_v24, 8.507059e+37 }
 0x353   :  { %v811_v63 = vadd.f32 %v1855_v54, %v810_v62  ;;  %v1859_v53 = vpop.eup %1858  ;;  %v283_v62 = vadd.s32 4294967295, %v257_v9 }
 0x354   :  { %v760_v15 = vadd.f32 1.0, %v1859_v53 }
 0x355   :  { %v815_v7 = vsel %vm814_vm2, %v1855_v54, %v811_v63  ;;  %vm285_vm2 = vcmp.ge.s32.totalorder %v283_v62, 0 }
 0x356   :  { %v820_v8 = vsel %vm817_vm4, %v819_v1, %v815_v7  ;;  %v1861_v3 = vpop.eup %1860  ;;  %1862 = vrcp.f32 %v760_v15  ;;  %v803_v37 = vand.u32 2147483648, %v760_v15  ;;  %vm797_vm9 = vweird.f32 %v760_v15 }
 0x357   :  { %832 = vrot.lane.b32.xlu2 %v820_v8, %s2112_s6  ;;  %v778_v17 = vmul.f32 %v1861_v3, %v759_v2  ;;  %vm783_vm3 = vweird.f32 %v1861_v3  ;;  %v801_v38 = vand.u32 2147483647, %v760_v15  ;;  %v616_v8 = vadd.f32 %v1821_v61, %v2316_v35 }
 0x358   :  { %vm784_vm6 = vmor %vm782_vm5, %vm783_vm3  ;;  %v804_v43 = vor.u32 1.1754944e-38, %v803_v37  ;;  %v1790_v37 = vld [vmem:[#allocation8 + $0x48] sm:$0xff] }
 0x359   :  { %v779_v16 = vsub.f32 1.0, %v778_v17  ;;  %vm802_vm11 = vcmp.eq.f32.partialorder %v801_v38, 8.507059e+37  ;;  %1111 = vmatpush.bf16.msra.mxu1 %v1790_v37 }
 0x35b   :  { %v780_v18 = vmul.f32 %v1861_v3, %v779_v16 }
 0x35c   :  { %v1863_v49 = vpop.eup %1862 }
 0x35d   :  { %v793_v19 = vmul.f32 %v1863_v49, %v760_v15  ;;  %v781_v21 = vadd.f32 %v1861_v3, %v780_v18  ;;  %vm798_vm8 = vweird.f32 %v1863_v49  ;;  %v2396_v15 = vsel %vm284_vm15, 1.0, %v2111_v48 }
 0x35e   :  { %vm799_vm10 = vmor %vm797_vm9, %vm798_vm8 }
 0x35f   :  { %v794_v22 = vsub.f32 1.0, %v793_v19  ;;  %v785_v5 = vsel %vm784_vm6, %v1861_v3, %v781_v21 }
 0x360   :  { %v790_v29 = vsel %vm787_vm7, %v789_v31, %v785_v5 }
 0x361   :  { %v795_v6 = vmul.f32 %v1863_v49, %v794_v22 }
 0x363   :  { %v796_v32 = vadd.f32 %v1863_v49, %v795_v6 }
 0x365   :  { %v800_v42 = vsel %vm799_vm10, %v1863_v49, %v796_v32  ;;  %v2400_v49 = vsel %vm285_vm2, 1.0, %v2111_v48 }
 0x366   :  { %v805_v44 = vsel %vm802_vm11, %v804_v43, %v800_v42 }
 0x373   :  { %v995_v0 = vpop.f32.mrf.mxu0 }
 0x379   :  { %v981_v20 = vpop.f32.mrf.mxu3 }
 0x37a   :  { %1015 = vrot.lane.b32.xlu0 %v981_v20, %s2102_s13  ;;  %v1004_v50 = vrot.slane %v981_v20, 6 }
 0x381   :  { %v983_v28 = vpop.f32.mrf.mxu3  ;;  %v827_v58 = vpop.permute.xlu2 %826 }
 0x382   :  { %828 = vrot.lane.b32.xlu0 %v790_v29, %s2112_s6  ;;  %1017 = vrot.lane.b32.xlu1 %v983_v28, %s2102_s13  ;;  %v1005_v39 = vrot.slane %v983_v28, 6  ;;  %v838_v63 = vmul.f32 %v827_v58, %v2346_v14  ;;  %v623_v28 = vadd.f32 %v1821_v61, %v2330_v56  ;;  %v997_v29 = vpop.f32.mrf.mxu0 }
 0x384   :  { %v1007_v1 = vsel %vm1006_vm14, %v1004_v50, %v1005_v39  ;;  %v1008_v7 = vsel %vm1006_vm14, %v1005_v39, %v1004_v50  ;;  %v842_v14 = vadd.f32 %v838_v63, %v616_v8 }
 0x385   :  { %v1009_v12 = vmul.f32 %v2382_v40, %v1008_v7  ;;  %v1010_v2 = vmul.f32 %v2385_v47, %v1007_v1 }
 0x386   :  { %v846_v5 = vmul.f32 0.70710677, %v842_v14 }
 0x387   :  { %v1011_v21 = vadd.f32 %v1824_v4, %v1009_v12  ;;  %v1012_v22 = vadd.f32 %v1824_v4, %v1010_v2 }
 0x38a   :  { %830 = vrot.lane.b32.xlu1 %v805_v44, %s2112_s6  ;;  %v621_v44 = vadd.f32 %v1821_v61, %v2324_v52 }
 0x3b1   :  { %v833_v18 = vpop.permute.xlu2 %832 }
 0x3ec   :  { %v1016_v54 = vpop.permute.xlu0 %1015 }
 0x3ed   :  { %v1021_v17 = vrot.slane %v1016_v54, 7 }
 0x3f4   :  { %v829_v53 = vpop.permute.xlu0 %828  ;;  %v1018_v3 = vpop.permute.xlu1 %1017 }
 0x3f5   :  { %v839_v16 = vmul.f32 %v829_v53, %v2354_v36  ;;  %v1022_v35 = vrot.slane %v1018_v3, 7  ;;  %v841_v36 = vmul.f32 %v833_v18, %v2362_v51  ;;  %v1789_v18 = vld [vmem:[#allocation8 + $0x40] sm:$0xff] }
 0x3f6   :  { %1112 = vmatpush.bf16.msra.mxu1 %v1789_v18 }
 0x3f7   :  { %v843_v41 = vadd.f32 %v839_v16, %v618_v10  ;;  %v1023_v19 = vsel %vm422_vm1, %v1021_v17, %v1022_v35  ;;  %v1024_v20 = vsel %vm422_vm1, %v1022_v35, %v1021_v17  ;;  %v845_v46 = vadd.f32 %v841_v36, %v623_v28 }
 0x3f8   :  { %v1025_v23 = vmul.f32 %v2396_v15, %v1024_v20  ;;  %v1026_v24 = vmul.f32 %v2400_v49, %v1023_v19  ;;  %v1796_v19 = vld [vmem:[#allocation10 + $0x74] sm:$0xf0] }
 0x3f9   :  { %v847_v48 = vmul.f32 0.70710677, %v843_v41  ;;  %v849_v9 = vmul.f32 0.70710677, %v845_v46  ;;  %v1730_v41 = vld [vmem:[#allocation10 + $0x70] sm:$0xf] }
 0x3fa   :  { %v1027_v6 = vadd.f32 %v1025_v23, %v1011_v21  ;;  %v1028_v31 = vadd.f32 %v1026_v24, %v1012_v22  ;;  %v1731_v20 = vor.u32 %v1796_v19, %v1730_v41  ;;  %v1722_v21 = vld [vmem:[#allocation10 + $0x60] sm:$0xf]  ;;  %v1794_v22 = vld [vmem:[#allocation10 + $0x64] sm:$0xf0]  ;;  %v1792_v24 = vld [vmem:[#allocation8 + $0x58] sm:$0xff] }
 0x3fb   :  { %v855_v32 = vpack.c.bf16 %v847_v48, %v846_v5  ;;  %v1723_v23 = vor.u32 %v1794_v22, %v1722_v21  ;;  %1229 = vmatpush.bf16.msrb.mxu0 %v1792_v24  ;;  %v1791_v5 = vld [vmem:[#allocation8 + $0x50] sm:$0xff] }
 0x3fc   :  { %v2410_v38 = vadd.f32 %v1027_v6, %v995_v0  ;;  %v2412_v42 = vadd.f32 %v1028_v31, %v997_v29  ;;  %v831_v43 = vpop.permute.xlu1 %830  ;;  %1270 = vmatpush.bf16.msrb.mxu1 %v1731_v20  ;;  %v1795_v24 = vld [vmem:[#allocation10 + $0x74] sm:$0xf] }
 0x3fd   :  { %v840_v45 = vmul.f32 %v831_v43, %v2370_v11  ;;  %1669 = vmatmul.msk.bf16.vlgmr.msrb.gmra.mxu2 %vm316_vm0, %v855_v32  ;;  %v1825_v43 = vld [vmem:[#allocation13 + $0x4] ss:$0 sm:$0xff] }
 0x3fe   :  { %v1698_v51 = vmul.f32 -1.442695, %v2410_v38  ;;  %v1699_v56 = vmul.f32 -1.442695, %v2412_v42 }
 0x3ff   :  { %v844_v34 = vadd.f32 %v840_v45, %v621_v44  ;;  %1230 = vmatpush.bf16.msrb.mxu0 %v1791_v5  ;;  %v1732_v5 = vld [vmem:[#allocation10 + $0x78] sm:$0xf0] }
 0x400   :  { %1864 = vpow2.f32 %v1698_v51  ;;  %1271 = vmatpush.bf16.msrb.mxu1 %v1723_v23 }
 0x401   :  { %1866 = vpow2.f32 %v1699_v56  ;;  %v848_v55 = vmul.f32 0.70710677, %v844_v34 }
 0x403   :  { %v856_v57 = vpack.c.bf16 %v849_v9, %v848_v55 }
 0x406   :  { %v1865_v54 = vpop.eup %1864 }
 0x407   :  { %v1867_v58 = vpop.eup %1866  ;;  %v1037_v39 = vadd.f32 1.0, %v1865_v54 }
 0x408   :  { %v1038_v52 = vadd.f32 1.0, %v1867_v58 }
 0x409   :  { %1868 = vrcp.f32 %v1037_v39  ;;  %v1050_v63 = vand.u32 2147483648, %v1037_v39  ;;  %v1048_v7 = vand.u32 2147483647, %v1037_v39  ;;  %vm1044_vm5 = vweird.f32 %v1037_v39 }
 0x40a   :  { %1870 = vrcp.f32 %v1038_v52  ;;  %v1065_v8 = vand.u32 2147483648, %v1038_v52  ;;  %v1063_v14 = vand.u32 2147483647, %v1038_v52  ;;  %vm1059_vm7 = vweird.f32 %v1038_v52 }
 0x40b   :  { %v1051_v12 = vor.u32 1.1754944e-38, %v1050_v63  ;;  %vm1049_vm8 = vcmp.eq.f32.partialorder %v1048_v7, 8.507059e+37 }
 0x40c   :  { %v1066_v3 = vor.u32 1.1754944e-38, %v1065_v8  ;;  %vm1064_vm10 = vcmp.eq.f32.partialorder %v1063_v14, 8.507059e+37 }
 0x40d   :  { %1670 = vmatmul.msk.bf16.gmra.mxu2 %vm316_vm0, %v856_v57 }
 0x40f   :  { %v1869_v11 = vpop.eup %1868 }
 0x410   :  { %v1871_v13 = vpop.eup %1870  ;;  %v1040_v61 = vmul.f32 %v1869_v11, %v1037_v39  ;;  %vm1045_vm4 = vweird.f32 %v1869_v11 }
 0x411   :  { %v1055_v62 = vmul.f32 %v1871_v13, %v1038_v52  ;;  %vm1060_vm3 = vweird.f32 %v1871_v13  ;;  %vm1046_vm6 = vmor %vm1044_vm5, %vm1045_vm4 }
 0x412   :  { %v1041_v50 = vsub.f32 1.0, %v1040_v61  ;;  %vm1061_vm9 = vmor %vm1059_vm7, %vm1060_vm3  ;;  %v2438_v61 = vld [vmem:[#allocation7] sm:$0xff] }
 0x413   :  { %v1056_v0 = vsub.f32 1.0, %v1055_v62 }
 0x414   :  { %v1042_v1 = vmul.f32 %v1869_v11, %v1041_v50 }
 0x415   :  { %v1057_v10 = vmul.f32 %v1871_v13, %v1056_v0  ;;  %v2442_v0 = vld [vmem:[#allocation7 + $0x8] sm:$0xff] }
 0x416   :  { %v1043_v4 = vadd.f32 %v1869_v11, %v1042_v1 }
 0x417   :  { %v1058_v2 = vadd.f32 %v1871_v13, %v1057_v10 }
 0x418   :  { %v1047_v53 = vsel %vm1046_vm6, %v1869_v11, %v1043_v4 }
 0x419   :  { %v1052_v17 = vsel %vm1049_vm8, %v1051_v12, %v1047_v53  ;;  %v1062_v16 = vsel %vm1061_vm9, %v1871_v13, %v1058_v2 }
 0x41a   :  { %1071 = vrot.lane.b32.xlu0 %v1052_v17, %s2112_s6  ;;  %v1067_v35 = vsel %vm1064_vm10, %v1066_v3, %v1062_v16 }
 0x41b   :  { %1073 = vrot.lane.b32.xlu1 %v1067_v35, %s2112_s6 }
 0x480   :  { %v889_v36 = vpop.f32.mrf.mxu2 }
 0x488   :  { %v891_v48 = vpop.f32.mrf.mxu2 }
 0x489   :  { %v892_v51 = vadd.f32 %v1825_v43, %v891_v48  ;;  %v1793_v48 = vld [vmem:[#allocation10 + $0x64] sm:$0xf] }
 0x48c   :  { %v1072_v6 = vpop.permute.xlu0 %1071 }
 0x48d   :  { %v2423_v31 = vmul.f32 %v1072_v6, %v2410_v38  ;;  %v1074_v28 = vpop.permute.xlu1 %1073  ;;  %v1724_v6 = vld [vmem:[#allocation10 + $0x68] sm:$0xf0] }
 0x48e   :  { %v2426_v29 = vmul.f32 %v1074_v28, %v2412_v42  ;;  %v890_v42 = vadd.f32 %v1825_v43, %v889_v36  ;;  %v1735_v36 = vor.u32 %v1795_v24, %v1732_v5  ;;  %v1727_v28 = vor.u32 %v1793_v48, %v1724_v6 }
 0x490   :  { %v1084_v32 = vpack.c.bf16 %v2426_v29, %v2423_v31  ;;  %v894_v37 = vpop.f32.mrf.mxu2  ;;  %v899_v34 = vpack.c.bf16 %v892_v51, %v890_v42 }
 0x491   :  { %v895_v46 = vadd.f32 %v1825_v43, %v894_v37 }
 0x492   :  { %1708 = vmatmul.msk.bf16.vlgmr.msra.gmra.mxu1 %vm316_vm0, %v1084_v32  ;;  %v1128_v9 = vsel %vm316_vm0, %v899_v34, 0 }
 0x493   :  { %1464 = vmatpush.bf16.msra.mxu1 %v2211_v30  ;;  %v1826_v30 = vld [vmem:[#allocation13 + $0x7] ss:$0 sm:$0xff] }
 0x497   :  { %1465 = vmatpush.bf16.msra.mxu1 %v2205_v25 }
 0x498   :  { %v896_v44 = vpop.f32.mrf.mxu2 }
 0x499   :  { %v897_v45 = vadd.f32 %v1825_v43, %v896_v44 }
 0x49b   :  { %v900_v38 = vpack.c.bf16 %v897_v45, %v895_v46 }
 0x49d   :  { %v1131_v56 = vsel %vm316_vm0, %v900_v38, 0 }
 0x49e   :  { %1139 = vmatpush.bf16.xpose.msra.mxu2 %v1131_v56  ;;  %1424 = vmatpush.bf16.xpose.msra.mxu0 %v1131_v56 }
 0x4a6   :  { %1140 = vmatpush.bf16.xpose.msra.mxu2 %v1128_v9  ;;  %1425 = vmatpush.bf16.xpose.msra.mxu0 %v1128_v9 }
 0x4ae   :  { %1284 = vmatpush.bf16.msrb.mxu2 %v1735_v36 }
 0x4b2   :  { %1285 = vmatpush.bf16.msrb.mxu2 %v1727_v28 }
 0x50f   :  { %v1114_v55 = vpop.f32.mrf.mxu1 }
 0x510   :  { %v1115_v57 = vadd.f32 %v1826_v30, %v1114_v55 }
 0x512   :  { %v1119_v25 = vadd.f32 %v1115_v57, %v2298_v26 }
 0x514   :  { %v1121_v52 = vmul.f32 0.70710677, %v1119_v25 }
 0x517   :  { %v1116_v54 = vpop.f32.mrf.mxu1 }
 0x518   :  { %v1117_v58 = vadd.f32 %v1826_v30, %v1116_v54 }
 0x51a   :  { %v1120_v39 = vadd.f32 %v1117_v58, %v2300_v27  ;;  %v1828_v58 = vld [vmem:[#allocation13 + $0x9] ss:$0 sm:$0xff] }
 0x51c   :  { %v1122_v11 = vmul.f32 0.70710677, %v1120_v39 }
 0x51e   :  { %v1123_v13 = vpack.c.bf16 %v1122_v11, %v1121_v52 }
 0x520   :  { %1709 = vmatmul.msk.bf16.vlgmr.msra.gmra.mxu2 %vm316_vm0, %v1123_v13 }
 0x5a3   :  { %v1142_v62 = vpop.f32.mrf.mxu2 }
 0x5a4   :  { %v1143_v50 = vadd.f32 %v1142_v62, %v2438_v61 }
 0x5a6   :  { %v1147_v63 = vsel %vm316_vm0, %v1143_v50, -inf }
 0x5a7   :  { %1148 = vmax.xlane.f32.xlu2 %v1147_v63 }
 0x5ab   :  { %v1144_v1 = vpop.f32.mrf.mxu2 }
 0x5ac   :  { %v1145_v7 = vadd.f32 %v1144_v1, %v2442_v0 }
 0x5ae   :  { %v1150_v8 = vsel %vm316_vm0, %v1145_v7, -inf }
 0x5af   :  { %1151 = vmax.xlane.f32.xlu0 %v1150_v8 }
 0x61a   :  { %v1149_v10 = vpop.xlane.xlu2 %1148 }
 0x61b   :  { %v1153_v14 = vsub.f32 %v1143_v50, %v1149_v10 }
 0x61d   :  { %v1155_v4 = vmul.f32 1.442695, %v1153_v14 }
 0x61f   :  { %1872 = vpow2.f32 %v1155_v4 }
 0x622   :  { %v1152_v12 = vpop.xlane.xlu0 %1151 }
 0x623   :  { %v1154_v2 = vsub.f32 %v1145_v7, %v1152_v12  ;;  %v1798_v12 = vld [vmem:[#allocation8 + $0x68] sm:$0xff] }
 0x624   :  { %1402 = vmatpush.bf16.msra.mxu3 %v1798_v12 }
 0x625   :  { %v1873_v53 = vpop.eup %1872  ;;  %v1157_v3 = vmul.f32 1.442695, %v1154_v2 }
 0x626   :  { %v1159_v17 = vsel %vm316_vm0, %v1873_v53, 0.0 }
 0x627   :  { %1874 = vpow2.f32 %v1157_v3  ;;  %1160 = vadd.xlane.f32.xlu1 %v1159_v17 }
 0x62d   :  { %v1875_v16 = vpop.eup %1874 }
 0x62e   :  { %v1162_v35 = vsel %vm316_vm0, %v1875_v16, 0.0 }
 0x62f   :  { %1163 = vadd.xlane.f32.xlu2 %v1162_v35 }
 0x69a   :  { %v1161_v18 = vpop.xlane.xlu1 %1160 }
 0x69b   :  { %1876 = vrcp.f32 %v1161_v18 }
 0x6a1   :  { %v1877_v19 = vpop.eup %1876 }
 0x6a2   :  { %v1164_v41 = vpop.xlane.xlu2 %1163  ;;  %v1167_v21 = vmul.f32 %v1877_v19, %v1873_v53  ;;  %v1797_v53 = vld [vmem:[#allocation8 + $0x60] sm:$0xff] }
 0x6a3   :  { %1878 = vrcp.f32 %v1164_v41  ;;  %1403 = vmatpush.bf16.msra.mxu3 %v1797_v53 }
 0x6a9   :  { %v1879_v20 = vpop.eup %1878 }
 0x6aa   :  { %v1168_v22 = vmul.f32 %v1879_v20, %v1875_v16 }
 0x6ac   :  { %v1169_v23 = vpack.c.bf16 %v1168_v22, %v1167_v21 }
 0x6ae   :  { %1710 = vmatmul.msk.bf16.vlgmr.msrb.gmra.mxu3 %vm316_vm0, %v1169_v23 }
 0x731   :  { %v1182_v32 = vpop.f32.mrf.mxu3 }
 0x732   :  { %v1187_v37 = vmul.f32 4.0, %v1182_v32 }
 0x734   :  { %v1189_v43 = vadd.f32 %v1187_v37, %v2423_v31 }
 0x736   :  { %v1191_v46 = vmul.f32 0.70710677, %v1189_v43 }
 0x738   :  { %v1193_v51 = vadd.f32 %v1191_v46, %v2332_v59 }
 0x739   :  { %v1184_v44 = vpop.f32.mrf.mxu3 }
 0x73a   :  { %v1188_v45 = vmul.f32 4.0, %v1184_v44  ;;  %v1195_v34 = vmul.f32 0.70710677, %v1193_v51 }
 0x73c   :  { %v1190_v38 = vadd.f32 %v1188_v45, %v2426_v29 }
 0x73e   :  { %v1192_v56 = vmul.f32 0.70710677, %v1190_v38 }
 0x740   :  { %v1194_v42 = vadd.f32 %v1192_v56, %v2334_v60 }
 0x742   :  { %v1196_v9 = vmul.f32 0.70710677, %v1194_v42 }
 0x744   :  { %v1202_v55 = vpack.c.bf16 %v1196_v9, %v1195_v34 }
 0x746   :  { %1719 = vmatmul.msk.bf16.vlgmr.msrb.gmra.mxu0 %vm316_vm0, %v1202_v55  ;;  %1736 = vmatmul.msk.bf16.vlgmr.msrb.gmra.mxu1 %vm316_vm0, %v1202_v55 }
 0x747   :  { %1737 = vmatmul.msk.bf16.vlgmr.msrb.gmra.mxu2 %vm316_vm0, %v1202_v55  ;;  %v1829_v55 = vld [vmem:[#allocation13 + $0xa] ss:$0 sm:$0xff] }
 0x7c3   :  { %v1273_v31 = vpop.f32.mrf.mxu1 }
 0x7c4   :  { %1306 = vrot.lane.b32.xlu2 %v1273_v31, %s2102_s13  ;;  %v1296_v59 = vrot.slane %v1273_v31, 6 }
 0x7ca   :  { %v1287_v57 = vpop.f32.mrf.mxu2 }
 0x7cb   :  { %v1275_v30 = vpop.f32.mrf.mxu1 }
 0x7cc   :  { %1308 = vrot.lane.b32.xlu0 %v1275_v30, %s2102_s13  ;;  %v1297_v29 = vrot.slane %v1275_v30, 6  ;;  %s2113_s13 = smov [#allocation14]  }
 0x7cd   :  { %s1567_s15 = sshll.u32 %s2113_s13, 4  ;;  %s1568_s15 = int_to_ptr.vmem [resolvable:$true] %s1567_s15 }
 0x7ce   :  { %v1298_v60 = vsel %vm1006_vm14, %v1296_v59, %v1297_v29  ;;  %v1299_v54 = vsel %vm1006_vm14, %v1297_v29, %v1296_v59 }
 0x7cf   :  { %v1300_v39 = vmul.f32 %v2382_v40, %v1299_v54  ;;  %v1301_v52 = vmul.f32 %v2385_v47, %v1298_v60 }
 0x7d1   :  { %v1302_v1 = vadd.f32 %v1828_v58, %v1300_v39  ;;  %v1303_v7 = vadd.f32 %v1828_v58, %v1301_v52  ;;  %v1232_v58 = vpop.f32.mrf.mxu0 }
 0x7d2   :  { %v1289_v40 = vpop.f32.mrf.mxu2 }
 0x7d9   :  { %v1234_v39 = vpop.f32.mrf.mxu0 }
 0x81e   :  { %v1307_v25 = vpop.permute.xlu2 %1306 }
 0x81f   :  { %v1312_v13 = vrot.slane %v1307_v25, 7 }
 0x83e   :  { %v1309_v11 = vpop.permute.xlu0 %1308 }
 0x83f   :  { %v1313_v62 = vrot.slane %v1309_v11, 7 }
 0x841   :  { %v1314_v50 = vsel %vm422_vm1, %v1312_v13, %v1313_v62  ;;  %v1315_v63 = vsel %vm422_vm1, %v1313_v62, %v1312_v13 }
 0x842   :  { %v1316_v8 = vmul.f32 %v2396_v15, %v1315_v63  ;;  %v1317_v10 = vmul.f32 %v2400_v49, %v1314_v50 }
 0x844   :  { %v1318_v14 = vadd.f32 %v1316_v8, %v1302_v1  ;;  %v1319_v4 = vadd.f32 %v1317_v10, %v1303_v7 }
 0x846   :  { %v1320_v47 = vadd.f32 %v1318_v14, %v1287_v57  ;;  %v1321_v2 = vadd.f32 %v1319_v4, %v1289_v40 }
 0x848   :  { %v1738_v3 = vmul.f32 -1.442695, %v1320_v47  ;;  %v1739_v17 = vmul.f32 -1.442695, %v1321_v2 }
 0x84a   :  { %1880 = vpow2.f32 %v1738_v3 }
 0x84b   :  { %1882 = vpow2.f32 %v1739_v17 }
 0x850   :  { %v1881_v33 = vpop.eup %1880 }
 0x851   :  { %v1883_v16 = vpop.eup %1882  ;;  %v1328_v35 = vadd.f32 1.0, %v1881_v33  ;;  %v1800_v33 = vld [vmem:[#allocation8 + $0x78] sm:$0xff] }
 0x852   :  { %v1329_v18 = vadd.f32 1.0, %v1883_v16  ;;  %1514 = vmatpush.bf16.msra.mxu2 %v1800_v33  ;;  %v1799_v16 = vld [vmem:[#allocation8 + $0x70] sm:$0xff] }
 0x853   :  { %1884 = vrcp.f32 %v1328_v35  ;;  %v1341_v21 = vand.u32 2147483648, %v1328_v35  ;;  %v1339_v24 = vand.u32 2147483647, %v1328_v35  ;;  %vm1335_vm12 = vweird.f32 %v1328_v35 }
 0x854   :  { %1886 = vrcp.f32 %v1329_v18  ;;  %v1356_v5 = vand.u32 2147483648, %v1329_v18  ;;  %v1354_v48 = vand.u32 2147483647, %v1329_v18  ;;  %vm1350_vm14 = vweird.f32 %v1329_v18 }
 0x855   :  { %v1342_v28 = vor.u32 1.1754944e-38, %v1341_v21  ;;  %vm1340_vm15 = vcmp.eq.f32.partialorder %v1339_v24, 8.507059e+37 }
 0x856   :  { %v1357_v43 = vor.u32 1.1754944e-38, %v1356_v5  ;;  %vm1355_vm4 = vcmp.eq.f32.partialorder %v1354_v48, 8.507059e+37  ;;  %1515 = vmatpush.bf16.msra.mxu2 %v1799_v16 }
 0x859   :  { %v1885_v15 = vpop.eup %1884 }
 0x85a   :  { %v1887_v49 = vpop.eup %1886  ;;  %v1331_v41 = vmul.f32 %v1885_v15, %v1328_v35  ;;  %vm1336_vm1 = vweird.f32 %v1885_v15  ;;  %v1802_v35 = vld [vmem:[#allocation11 + $0x8] sm:$0xff] }
 0x85b   :  { %v1346_v19 = vmul.f32 %v1887_v49, %v1329_v18  ;;  %vm1351_vm11 = vweird.f32 %v1887_v49  ;;  %vm1337_vm13 = vmor %vm1335_vm12, %vm1336_vm1  ;;  %1553 = vmatpush.bf16.msrb.mxu3 %v1802_v35 }
 0x85c   :  { %v1332_v20 = vsub.f32 1.0, %v1331_v41  ;;  %vm1352_vm2 = vmor %vm1350_vm14, %vm1351_vm11  ;;  %v1827_v41 = vld [vmem:[#allocation13 + $0x8] ss:$0 sm:$0xff] }
 0x85d   :  { %v1347_v22 = vsub.f32 1.0, %v1346_v19  ;;  %v1235_v24 = vadd.f32 %v1827_v41, %v1234_v39 }
 0x85e   :  { %v1333_v23 = vmul.f32 %v1885_v15, %v1332_v20 }
 0x85f   :  { %v1348_v36 = vmul.f32 %v1887_v49, %v1347_v22  ;;  %v1233_v22 = vadd.f32 %v1827_v41, %v1232_v58 }
 0x860   :  { %v1334_v6 = vadd.f32 %v1885_v15, %v1333_v23 }
 0x861   :  { %v1349_v32 = vadd.f32 %v1887_v49, %v1348_v36 }
 0x862   :  { %v1338_v37 = vsel %vm1337_vm13, %v1885_v15, %v1334_v6 }
 0x863   :  { %v1343_v44 = vsel %vm1340_vm15, %v1342_v28, %v1338_v37  ;;  %v1353_v46 = vsel %vm1352_vm2, %v1887_v49, %v1349_v32  ;;  %v1801_v37 = vld [vmem:[#allocation11] sm:$0xff] }
 0x864   :  { %1362 = vrot.lane.b32.xlu1 %v1343_v44, %s2112_s6  ;;  %v1358_v45 = vsel %vm1355_vm4, %v1357_v43, %v1353_v46  ;;  %1554 = vmatpush.bf16.msrb.mxu3 %v1801_v37  ;;  %v1830_v44 = vld [vmem:[#allocation13 + $0xb] ss:$0 sm:$0xff] }
 0x865   :  { %1364 = vrot.lane.b32.xlu0 %v1358_v45, %s2112_s6 }
 0x8d6   :  { %v1363_v38 = vpop.permute.xlu1 %1362 }
 0x8d7   :  { %v1368_v51 = vmul.f32 %v1363_v38, %v1320_v47  ;;  %v1365_v56 = vpop.permute.xlu0 %1364 }
 0x8d8   :  { %v1369_v42 = vmul.f32 %v1365_v56, %v1321_v2  ;;  %v1831_v56 = vld [vmem:[#allocation13 + $0xc] ss:$0 sm:$0xff] }
 0x8da   :  { %v1375_v34 = vpack.c.bf16 %v1369_v42, %v1368_v51 }
 0x8dc   :  { %1748 = vmatmul.msk.bf16.vlgmr.msra.gmra.mxu3 %vm316_vm0, %v1375_v34 }
 0x95f   :  { %v1405_v9 = vpop.f32.mrf.mxu3 }
 0x960   :  { %v1406_v31 = vadd.f32 %v1829_v55, %v1405_v9 }
 0x962   :  { %v1410_v29 = vadd.f32 %v1406_v31, %v2298_v26 }
 0x964   :  { %v1412_v60 = vmul.f32 0.70710677, %v1410_v29 }
 0x967   :  { %v1407_v30 = vpop.f32.mrf.mxu3 }
 0x968   :  { %v1408_v59 = vadd.f32 %v1829_v55, %v1407_v30 }
 0x96a   :  { %v1411_v57 = vadd.f32 %v1408_v59, %v2300_v27 }
 0x96c   :  { %v1413_v54 = vmul.f32 0.70710677, %v1411_v57 }
 0x96e   :  { %v1414_v25 = vpack.c.bf16 %v1413_v54, %v1412_v60 }
 0x970   :  { %1749 = vmatmul.msk.bf16.vlgmr.msra.gmra.mxu0 %vm316_vm0, %v1414_v25 }
 0x9ed   :  { %v1427_v52 = vpop.f32.mrf.mxu0 }
 0x9ee   :  { %v1428_v11 = vadd.f32 %v1427_v52, %v2438_v61 }
 0x9f0   :  { %v1432_v13 = vsel %vm316_vm0, %v1428_v11, -inf }
 0x9f1   :  { %1433 = vmax.xlane.f32.xlu2 %v1432_v13 }
 0x9f5   :  { %v1429_v62 = vpop.f32.mrf.mxu0 }
 0x9f6   :  { %v1430_v50 = vadd.f32 %v1429_v62, %v2442_v0 }
 0x9f8   :  { %v1435_v26 = vsel %vm316_vm0, %v1430_v50, -inf }
 0x9f9   :  { %1436 = vmax.xlane.f32.xlu1 %v1435_v26 }
 0xa64   :  { %v1434_v27 = vpop.xlane.xlu2 %1433 }
 0xa65   :  { %v1438_v63 = vsub.f32 %v1428_v11, %v1434_v27 }
 0xa67   :  { %v1440_v1 = vmul.f32 1.442695, %v1438_v63 }
 0xa69   :  { %1888 = vpow2.f32 %v1440_v1 }
 0xa6c   :  { %v1437_v7 = vpop.xlane.xlu1 %1436 }
 0xa6d   :  { %v1439_v8 = vsub.f32 %v1430_v50, %v1437_v7 }
 0xa6f   :  { %v1889_v10 = vpop.eup %1888  ;;  %v1442_v14 = vmul.f32 1.442695, %v1439_v8 }
 0xa70   :  { %v1444_v4 = vsel %vm316_vm0, %v1889_v10, 0.0 }
 0xa71   :  { %1890 = vpow2.f32 %v1442_v14  ;;  %1445 = vadd.xlane.f32.xlu0 %v1444_v4 }
 0xa77   :  { %v1891_v61 = vpop.eup %1890 }
 0xa78   :  { %v1447_v40 = vsel %vm316_vm0, %v1891_v61, 0.0 }
 0xa79   :  { %1448 = vadd.xlane.f32.xlu2 %v1447_v40 }
 0xae4   :  { %v1446_v0 = vpop.xlane.xlu0 %1445 }
 0xae5   :  { %1892 = vrcp.f32 %v1446_v0 }
 0xaeb   :  { %v1893_v47 = vpop.eup %1892 }
 0xaec   :  { %v1449_v12 = vpop.xlane.xlu2 %1448  ;;  %v1452_v53 = vmul.f32 %v1893_v47, %v1889_v10 }
 0xaed   :  { %1894 = vrcp.f32 %v1449_v12 }
 0xaf3   :  { %v1895_v2 = vpop.eup %1894 }
 0xaf4   :  { %v1453_v3 = vmul.f32 %v1895_v2, %v1891_v61 }
 0xaf6   :  { %v1454_v17 = vpack.c.bf16 %v1453_v3, %v1452_v53 }
 0xaf8   :  { %1750 = vmatmul.msk.bf16.vlgmr.msra.gmra.mxu1 %vm316_vm0, %v1454_v17 }
 0xb75   :  { %v1467_v18 = vpop.f32.mrf.mxu1 }
 0xb76   :  { %v1472_v15 = vmul.f32 4.0, %v1467_v18 }
 0xb78   :  { %v1474_v49 = vadd.f32 %v1472_v15, %v1368_v51 }
 0xb7a   :  { %v1476_v20 = vmul.f32 0.70710677, %v1474_v49 }
 0xb7c   :  { %v1478_v5 = vadd.f32 %v1476_v20, %v1233_v22 }
 0xb7d   :  { %v1469_v19 = vpop.f32.mrf.mxu1 }
 0xb7e   :  { %v1473_v21 = vmul.f32 4.0, %v1469_v19  ;;  %v1480_v6 = vmul.f32 0.70710677, %v1478_v5 }
 0xb80   :  { %v1475_v23 = vadd.f32 %v1473_v21, %v1369_v42 }
 0xb82   :  { %v1477_v36 = vmul.f32 0.70710677, %v1475_v23 }
 0xb84   :  { %v1479_v48 = vadd.f32 %v1477_v36, %v1235_v24 }
 0xb86   :  { %v1481_v28 = vmul.f32 0.70710677, %v1479_v48 }
 0xb88   :  { %v1487_v32 = vpack.c.bf16 %v1481_v28, %v1480_v6 }
 0xb8a   :  { %1759 = vmatmul.msk.bf16.vlgmr.msra.gmra.mxu2 %vm316_vm0, %v1487_v32 }
 0xc0d   :  { %v1517_v43 = vpop.f32.mrf.mxu2 }
 0xc0e   :  { %v1518_v45 = vadd.f32 %v1830_v44, %v1517_v43 }
 0xc15   :  { %v1519_v46 = vpop.f32.mrf.mxu2 }
 0xc16   :  { %v1520_v38 = vadd.f32 %v1830_v44, %v1519_v46 }
 0xc18   :  { %v1526_v51 = vpack.c.bf16 %v1520_v38, %v1518_v45 }
 0xc1a   :  { %1768 = vmatmul.msk.bf16.vlgmr.msrb.gmra.mxu3 %vm316_vm0, %v1526_v51 }
 0xc9d   :  { %v1556_v42 = vpop.f32.mrf.mxu3 }
 0xc9e   :  { %v1557_v34 = vadd.f32 %v1831_v56, %v1556_v42 }
 0xca0   :  { %1561 = vst [vmem:[#allocation14] sm:$0xff] %v1557_v34 }
 0xca5   :  { %v1558_v9 = vpop.f32.mrf.mxu3 }
 0xca6   :  { %v1559_v55 = vadd.f32 %v1831_v56, %v1558_v9 }
 0xca8   :  { %1562 = vst [vmem:[#allocation14 + $0x8] sm:$0xff] %v1559_v55 }
 0xca9   :  { %1575 = dma.vmem_to_hbm [thread:$0]  %s1568_s15, 256, %s1570_s17, [#allocation4], %s2099_s9, %s2099_s9, %s2100_s10  }
 0xcaa   :  { %2096 = dma.done.wait [#allocation4], 256  }
 0xcab   :  { %2097 = vsyncadd [#allocation4], 4294967040 }
 0xcac   :  { %1580 = vsyncpa [#allocation3], 1 }
 0xcad   :  { %1581 = vsyncpa [#allocation6], 1 }
 0xcae   :  { %1582 = vsyncpa [#allocation9], 1 }
 0xcaf   :  { %1583 = vsyncpa [#allocation12], 1 }
 0xcb0   :  { %1584 = vsyncpa [#allocation4], 1 }

</bundles_post_ra>
